<compile_context>
chip_gen: v7x
topology: tpu7x:2x2x1
jax: 0.10.0
libtpu: 0.0.40
codegen_flags: <defaults>
</compile_context>

<pallas_src>
import functools

import jax
import jax.numpy as jnp
from jax import lax
from jax.experimental import pallas as pl
from jax.experimental.pallas import tpu as pltpu


def talking_head_attention_kernel(x_ref, wq_ref, wk_ref, wv_ref, wproj_ref,
                                  bproj_ref, bias_ref, wl_ref, ww_ref, bw_ref,
                                  o_ref, k_scr, v_scr, vsum_scr,
                                  *, num_heads, head_dim, q_tile, bias_is_full):
    """One grid step == one (batch, query-tile).

    x_ref    : (1, N, C)               VMEM bf16  full sequence of this batch
    wq_ref   : (C, C)                  VMEM bf16  Wq^T with 1/sqrt(hd) folded in
    wk_ref   : (C, C)                  VMEM bf16  Wk^T
    wv_ref   : (C, C)                  VMEM bf16  Wv^T
    wproj_ref: (C, C)                  VMEM bf16  Wproj^T
    bproj_ref: (1, C)                  VMEM f32
    bias_ref : (H, N, N) | (H, TQ, N)  VMEM bf16  proj_l-premixed rpe bias
    wl_ref   : (H, H)                  SMEM f32   proj_l weight (torch [out,in])
    ww_ref   : (H, H)                  SMEM f32   proj_w weight
    bw_ref   : (H,)                    SMEM f32   proj_w bias
    o_ref    : (1, TQ, C)              VMEM f32
    k_scr    : (N, C)                  VMEM bf16  per-batch keys   (head-concat)
    v_scr    : (N, C)                  VMEM bf16  per-batch values (head-concat)
    vsum_scr : (1, C)                  VMEM f32   per-batch column-sum of values
    """
    H, hd, TQ = num_heads, head_dim, q_tile
    C = H * hd
    qi = pl.program_id(1)

    # --- per-batch K/V projection + V column-sum, first query tile only ------
    # NOTE: correctness relies on grid=(B, QT) with the query axis "arbitrary"
    # (sequential); the scratch written at qi == 0 is reused for qi > 0.
    @pl.when(qi == 0)
    def _():
        xa = x_ref[0]                                             # (N, C) bf16
        k_scr[...] = jnp.dot(xa, wk_ref[...],
                             preferred_element_type=jnp.float32).astype(jnp.bfloat16)
        v_f32 = jnp.dot(xa, wv_ref[...],
                        preferred_element_type=jnp.float32)       # (N, C) f32
        v_scr[...] = v_f32.astype(jnp.bfloat16)
        vsum_scr[...] = jnp.sum(v_f32, axis=0, keepdims=True)     # (1, C) f32

    # --- Q projection for this query tile (scale already folded into Wq) -----
    row = pl.multiple_of(qi * TQ, TQ)
    xq = x_ref[0, pl.ds(row, TQ), :]                              # (TQ, C) bf16
    q_all = jnp.dot(xq, wq_ref[...],
                    preferred_element_type=jnp.float32).astype(jnp.bfloat16)
    k_all = k_scr[...]                                            # (N, C) bf16
    v_all = v_scr[...]                                            # (N, C) bf16

    # --- per-head raw scores s_h = q_h @ k_h^T (no explicit transpose) -------
    # TODO(synk): for head_dim not a multiple of 128 these lane slices force
    # relayouts before each MXU op; a head-major (H, N, hd_pad) scratch layout
    # would avoid them for large models.
    scores = []
    for h in range(H):
        qh = q_all[:, h * hd:(h + 1) * hd]                        # (TQ, hd)
        kh = k_all[:, h * hd:(h + 1) * hd]                        # (N, hd)
        scores.append(lax.dot_general(
            qh, kh, (((1,), (1,)), ((), ())),
            preferred_element_type=jnp.float32))                  # (TQ, N) f32

    # --- pre-softmax talking-heads mix (proj_l) + premixed bias, softmax -----
    # Probabilities are stored in bf16 immediately (halves live intermediates;
    # they are consumed in bf16 by the @V matmul anyway).
    # TODO(synk): for H >= 16 this HxH mix should become a dot_general over the
    # head axis on the MXU instead of 2*H^2 full-tile VPU passes.
    probs = []
    for h in range(H):
        s = scores[0] * wl_ref[h, 0]
        for g in range(1, H):
            s = s + scores[g] * wl_ref[h, g]
        if bias_is_full:
            b = bias_ref[h, pl.ds(row, TQ), :]                    # (TQ, N) bf16
        else:
            b = bias_ref[h]                                       # (TQ, N) bf16
        s = s + b.astype(jnp.float32)
        s = s - jnp.max(s, axis=-1, keepdims=True)
        e = jnp.exp(s)
        p = e * pl.reciprocal(jnp.sum(e, axis=-1, keepdims=True), approx=False)
        probs.append(p.astype(jnp.bfloat16))

    # --- post-softmax mix (proj_w, bf16), attn @ v, per-head output proj -----
    # The proj_w bias is applied as bw[h] * colsum(v_h) on the (TQ, hd) context
    # instead of a (TQ, N) broadcast add (exact, by linearity).
    acc = jnp.zeros((TQ, C), jnp.float32)
    for h in range(H):
        p = probs[0] * ww_ref[h, 0].astype(jnp.bfloat16)
        for g in range(1, H):
            p = p + probs[g] * ww_ref[h, g].astype(jnp.bfloat16)
        ctx = jnp.dot(p, v_all[:, h * hd:(h + 1) * hd],
                      preferred_element_type=jnp.float32)         # (TQ, hd)
        ctx = ctx + bw_ref[h] * vsum_scr[:, h * hd:(h + 1) * hd]  # (TQ, hd)
        acc = acc + jnp.dot(ctx.astype(jnp.bfloat16),
                            wproj_ref[h * hd:(h + 1) * hd, :],
                            preferred_element_type=jnp.float32)   # (TQ, C)

    o_ref[0] = (acc + bproj_ref[...]).astype(o_ref.dtype)


def _vmem_limit_bytes():
    """~3/4 of the physical per-core VMEM (~96 MiB on v5e/v6e, ~48 MiB on v7x);
    conservative 64 MiB fallback if the hardware query is unavailable."""
    try:
        info = pltpu.get_tpu_info()
        cap = int(getattr(info, "vmem_capacity_bytes", 0) or 0)
        if cap > 0:
            return (cap * 3) // 4
    except Exception:
        pass
    return 64 * 1024 * 1024


def _pick_q_tile(n_q, n_k, num_heads, budget_bytes, bias_streamed):
    """Largest MXU-friendly query tile dividing n_q whose per-tile softmax
    intermediates (H f32 scores + H bf16 probs + optional double-buffered bf16
    bias stream) fit `budget_bytes`. Never picks MXU-starving 8/16/32 tiles
    unless the sequence itself is that short."""
    per_row = num_heads * n_k * (4 + 2)                 # f32 scores + bf16 probs
    if bias_streamed:
        per_row += 2 * num_heads * n_k * 2              # 2 buffers of bf16 bias
    cap = max(budget_bytes // max(per_row, 1), 8)
    for t in (512, 256, 128):                           # MXU-friendly first
        if n_q % t == 0 and t <= cap:
            return t
    if n_q <= min(512, cap):
        return n_q                                      # whole sequence, 1 tile
    best = 8
    for t in range(2, int(min(512, cap)) + 1):
        if n_q % t == 0:
            best = t
    return best


def attention_talking_head_forward(x, wqkv, wl, bl, ww, bw, wproj, bproj,
                                   rpe_bias, *, num_heads, q_tile=None):
    """x: (B, N, C) f32. Weights in torch layout (out_features, in_features).
    rpe_bias: (H, N, N) gathered relative-position bias."""
    B, N, C = x.shape
    H = num_heads
    hd = C // H
    scale = hd ** (-0.5)

    # Host-side prep: split / pre-transpose the qkv weight, fold the q scale
    # into Wq, cast MXU operands to bf16, pre-mix the rpe bias with proj_l
    # (the pre-softmax talking-head mix is linear) and keep it in bf16.
    wq_t = (wqkv[:C].T * scale).astype(jnp.bfloat16)           # (C, C)
    wk_t = wqkv[C:2 * C].T.astype(jnp.bfloat16)                # (C, C)
    wv_t = wqkv[2 * C:].T.astype(jnp.bfloat16)                 # (C, C)
    wproj_t = wproj.T.astype(jnp.bfloat16)                     # (C, C)
    bproj2 = bproj.reshape(1, C).astype(jnp.float32)
    bias_mixed = (jnp.einsum('hg,gqk->hqk', wl.astype(jnp.float32),
                             rpe_bias.astype(jnp.float32))
                  + bl.astype(jnp.float32)[:, None, None]).astype(jnp.bfloat16)
    x_bf = x.astype(jnp.bfloat16)

    vmem_limit = _vmem_limit_bytes()

    # Resident (H, N, N) bf16 bias if it fits comfortably; otherwise stream a
    # (H, TQ, N) bf16 block per query tile (re-read once per batch element).
    bias_full_bytes = 2 * H * N * N * 2                        # 2 buffers, bf16
    bias_is_full = bias_full_bytes <= vmem_limit // 3

    if q_tile is None:
        fixed = (2 * 2 * N * C                                 # x block (bf16) x2
                 + 4 * C * C * 2 * 2                           # 4 bf16 weights x2
                 + 2 * N * C * 2 + C * 4                       # K/V/vsum scratch
                 + (bias_full_bytes if bias_is_full else 0))
        budget = max(vmem_limit - fixed, 4 * 1024 * 1024)
        q_tile = _pick_q_tile(N, N, H, budget, not bias_is_full)
    TQ = q_tile
    assert N % TQ == 0, "q_tile must divide the sequence length"
    QT = N // TQ

    if bias_is_full:
        # Constant block index -> fetched once, resident across the whole grid.
        bias_spec = pl.BlockSpec((H, N, N), lambda b, q: (0, 0, 0))
    else:
        # TODO(synk): on v5e consider pipeline_mode=pl.Buffered(3) here if the
        # bias stream is not fully hidden behind the softmax/mix compute.
        bias_spec = pl.BlockSpec((H, TQ, N), lambda b, q: (0, q, 0))

    kernel = functools.partial(talking_head_attention_kernel,
                               num_heads=H, head_dim=hd, q_tile=TQ,
                               bias_is_full=bias_is_full)

    # TODO(synk): with B == 1 on v7x the batch-parallel megacore split leaves a
    # TensorCore idle; a query-parallel variant (K/V projected in a prologue
    # call) would be needed for single-sequence workloads.
    return pl.pallas_call(
        kernel,
        out_shape=jax.ShapeDtypeStruct((B, N, C), x.dtype),
        grid_spec=pltpu.PrefetchScalarGridSpec(
            num_scalar_prefetch=0,
            grid=(B, QT),
            in_specs=[
                pl.BlockSpec((1, N, C), lambda b, q: (b, 0, 0)),      # x (full seq)
                pl.BlockSpec((C, C), lambda b, q: (0, 0)),            # Wq^T * scale
                pl.BlockSpec((C, C), lambda b, q: (0, 0)),            # Wk^T
                pl.BlockSpec((C, C), lambda b, q: (0, 0)),            # Wv^T
                pl.BlockSpec((C, C), lambda b, q: (0, 0)),            # Wproj^T
                pl.BlockSpec((1, C), lambda b, q: (0, 0)),            # b_proj
                bias_spec,                                            # rpe bias (bf16)
                pl.BlockSpec(memory_space=pltpu.MemorySpace.SMEM),    # W_l
                pl.BlockSpec(memory_space=pltpu.MemorySpace.SMEM),    # W_w
                pl.BlockSpec(memory_space=pltpu.MemorySpace.SMEM),    # b_w
            ],
            out_specs=pl.BlockSpec((1, TQ, C), lambda b, q: (b, q, 0)),
            scratch_shapes=[
                pltpu.VMEM((N, C), jnp.bfloat16),                     # K scratch
                pltpu.VMEM((N, C), jnp.bfloat16),                     # V scratch
                pltpu.VMEM((1, C), jnp.float32),                      # colsum(V)
            ],
        ),
        compiler_params=pltpu.CompilerParams(
            dimension_semantics=("parallel", "arbitrary"),
            vmem_limit_bytes=vmem_limit),
    )(x_bf, wq_t, wk_t, wv_t, wproj_t, bproj2, bias_mixed,
      wl.astype(jnp.float32), ww.astype(jnp.float32), bw.astype(jnp.float32))


def reference_forward(x, wqkv, wl, bl, ww, bw, wproj, bproj, rpe_bias,
                      *, num_heads):
    """Pure-JAX f32 reference mirroring the PyTorch forward (mask=None, eval)."""
    B, N, C = x.shape
    H = num_heads
    hd = C // H
    scale = hd ** (-0.5)
    hi = lax.Precision.HIGHEST
    qkv = jnp.dot(x, wqkv.T, precision=hi)                        # (B, N, 3C)
    qkv = qkv.reshape(B, N, 3, H, hd).transpose(2, 0, 3, 1, 4)
    q, k, v = qkv[0] * scale, qkv[1], qkv[2]                      # (B, H, N, hd)
    attn = jnp.einsum('bhqd,bhkd->bhqk', q, k, precision=hi)
    attn = attn + rpe_bias[None]                                  # rpe
    attn = (jnp.einsum('hg,bgqk->bhqk', wl, attn, precision=hi)
            + bl[None, :, None, None])                            # proj_l
    attn = jax.nn.softmax(attn, axis=-1)
    attn = (jnp.einsum('hg,bgqk->bhqk', ww, attn, precision=hi)
            + bw[None, :, None, None])                            # proj_w
    out = jnp.einsum('bhqk,bhkd->bhqd', attn, v, precision=hi)
    out = out.transpose(0, 2, 1, 3).reshape(B, N, C)
    return jnp.dot(out, wproj.T, precision=hi) + bproj


if __name__ == "__main__":
    B, N, C, H = 2, 16, 32, 4

    key = jax.random.PRNGKey(0)
    ks = jax.random.split(key, 10)
    x = jax.random.normal(ks[0], (B, N, C), dtype=jnp.float32)
    wqkv = jax.random.normal(ks[1], (3 * C, C), dtype=jnp.float32) * 0.1
    wproj = jax.random.normal(ks[2], (C, C), dtype=jnp.float32) * 0.1
    bproj = jax.random.normal(ks[3], (C,), dtype=jnp.float32) * 0.1
    wl = jax.random.normal(ks[4], (H, H), dtype=jnp.float32) * 0.3
    bl = jax.random.normal(ks[5], (H,), dtype=jnp.float32) * 0.1
    ww = jax.random.normal(ks[6], (H, H), dtype=jnp.float32) * 0.3
    bw = jax.random.normal(ks[7], (H,), dtype=jnp.float32) * 0.1

    # Relative-position bias: table gathered by an (N, N) index.
    # TODO(synk): the module's generate_2d_concatenated_..._index() is not
    # reproduced; a deterministic 1-D relative index stands in. The kernel only
    # consumes the gathered (H, N, N) bias, so it is agnostic to the index rule.
    rel_idx = (jnp.arange(N)[:, None] - jnp.arange(N)[None, :]) + (N - 1)
    table = jax.random.normal(ks[8], (H, 2 * N - 1), dtype=jnp.float32) * 0.1
    rpe_bias = table[:, rel_idx]                                  # (H, N, N)

    # q_tile=8 is a tiny-demo override: it forces 2 query tiles so the per-batch
    # K/V scratch reuse path is exercised. Production sizes use the default
    # MXU-friendly heuristic (>=128 rows).
    out = attention_talking_head_forward(
        x, wqkv, wl, bl, ww, bw, wproj, bproj, rpe_bias,
        num_heads=H, q_tile=8)
    out = jax.block_until_ready(out)

    ref = reference_forward(x, wqkv, wl, bl, ww, bw, wproj, bproj, rpe_bias,
                            num_heads=H)
    assert out.shape == (B, N, C)
    max_err = jnp.max(jnp.abs(out - ref))
    assert jnp.allclose(out, ref, atol=5e-2, rtol=5e-2), (
        f"max abs err {max_err}")

    print("KERNEL_OK")
</pallas_src>

<mosaic_0001>
module attributes {stable_mosaic.version = 11 : i64} {
  func.func @talking_head_attention_kernel(%arg0: i32, %arg1: i32, %arg2: memref<1x16x32xbf16, #tpu.memory_space<vmem>>, %arg3: memref<32x32xbf16, #tpu.memory_space<vmem>>, %arg4: memref<32x32xbf16, #tpu.memory_space<vmem>>, %arg5: memref<32x32xbf16, #tpu.memory_space<vmem>>, %arg6: memref<32x32xbf16, #tpu.memory_space<vmem>>, %arg7: memref<1x32xf32, #tpu.memory_space<vmem>>, %arg8: memref<4x16x16xbf16, #tpu.memory_space<vmem>>, %arg9: memref<4x4xf32, #tpu.memory_space<smem>>, %arg10: memref<4x4xf32, #tpu.memory_space<smem>>, %arg11: memref<4xf32, #tpu.memory_space<smem>>, %arg12: memref<1x8x32xf32, #tpu.memory_space<vmem>>, %arg13: memref<16x32xbf16, #tpu.memory_space<vmem>>, %arg14: memref<16x32xbf16, #tpu.memory_space<vmem>>, %arg15: memref<1x32xf32, #tpu.memory_space<vmem>>) attributes {dimension_semantics = [#tpu.dimension_semantics<parallel>, #tpu.dimension_semantics<arbitrary>], iteration_bounds = array<i64: 2, 2>, scalar_prefetch = 0 : i64, scratch_operands = 3 : i64, tpu.core_type = #tpu.core_type<tc>, window_params = [{transform_indices = @transform_0, window_bounds = array<i64: 1, 16, 32>}, {pipeline_mode = #tpu.pipeline_mode<synchronous>, transform_indices = @transform_1, window_bounds = array<i64: 32, 32>}, {pipeline_mode = #tpu.pipeline_mode<synchronous>, transform_indices = @transform_2, window_bounds = array<i64: 32, 32>}, {pipeline_mode = #tpu.pipeline_mode<synchronous>, transform_indices = @transform_3, window_bounds = array<i64: 32, 32>}, {pipeline_mode = #tpu.pipeline_mode<synchronous>, transform_indices = @transform_4, window_bounds = array<i64: 32, 32>}, {pipeline_mode = #tpu.pipeline_mode<synchronous>, transform_indices = @transform_5, window_bounds = array<i64: 1, 32>}, {pipeline_mode = #tpu.pipeline_mode<synchronous>, transform_indices = @transform_6, window_bounds = array<i64: 4, 16, 16>}, {transform_indices = @transform_7, window_bounds = array<i64: 4, 4>}, {transform_indices = @transform_8, window_bounds = array<i64: 4, 4>}, {transform_indices = @transform_9, window_bounds = array<i64: 4>}, {transform_indices = @transform_10, window_bounds = array<i64: 1, 8, 32>}]} {
    %c0_i32 = arith.constant 0 : i32
    %0 = arith.cmpi eq, %arg1, %c0_i32 : i32
    %1 = arith.extui %0 : i1 to i32
    %c0_i32_0 = arith.constant 0 : i32
    %2 = arith.cmpi ne, %1, %c0_i32_0 : i32
    scf.if %2 {
      %c0_120 = arith.constant 0 : index
      %c0_121 = arith.constant 0 : index
      %c0_122 = arith.constant 0 : index
      %280 = vector.load %arg2[%c0_120, %c0_121, %c0_122] : memref<1x16x32xbf16, #tpu.memory_space<vmem>>, vector<1x16x32xbf16>
      %281 = vector.shape_cast %280 : vector<1x16x32xbf16> to vector<16x32xbf16>
      %c0_123 = arith.constant 0 : index
      %c0_124 = arith.constant 0 : index
      %282 = vector.load %arg4[%c0_123, %c0_124] : memref<32x32xbf16, #tpu.memory_space<vmem>>, vector<32x32xbf16>
      %cst_125 = arith.constant dense<0.000000e+00> : vector<16x32xf32>
      %283 = tpu.matmul %281, %282, %cst_125 {dimension_numbers = #tpu.dot_dimension_numbers<[1], [0], [0], [1], [0, 0, 1, 1], [], []>} : vector<16x32xbf16>, vector<32x32xbf16>, vector<16x32xf32> -> vector<16x32xf32>
      %284 = arith.truncf %283 : vector<16x32xf32> to vector<16x32xbf16>
      %c0_126 = arith.constant 0 : index
      %c0_127 = arith.constant 0 : index
      %285 = vector.load %arg13[%c0_126, %c0_127] : memref<16x32xbf16, #tpu.memory_space<vmem>>, vector<16x32xbf16>
      tpu.vector_store %arg13[%c0_126, %c0_127], %284 {strides = array<i32>} : memref<16x32xbf16, #tpu.memory_space<vmem>>, vector<16x32xbf16>,
      %c0_128 = arith.constant 0 : index
      %c0_129 = arith.constant 0 : index
      %286 = vector.load %arg5[%c0_128, %c0_129] : memref<32x32xbf16, #tpu.memory_space<vmem>>, vector<32x32xbf16>
      %cst_130 = arith.constant dense<0.000000e+00> : vector<16x32xf32>
      %287 = tpu.matmul %281, %286, %cst_130 {dimension_numbers = #tpu.dot_dimension_numbers<[1], [0], [0], [1], [0, 0, 1, 1], [], []>} : vector<16x32xbf16>, vector<32x32xbf16>, vector<16x32xf32> -> vector<16x32xf32>
      %288 = arith.truncf %287 : vector<16x32xf32> to vector<16x32xbf16>
      %c0_131 = arith.constant 0 : index
      %c0_132 = arith.constant 0 : index
      %289 = vector.load %arg14[%c0_131, %c0_132] : memref<16x32xbf16, #tpu.memory_space<vmem>>, vector<16x32xbf16>
      tpu.vector_store %arg14[%c0_131, %c0_132], %288 {strides = array<i32>} : memref<16x32xbf16, #tpu.memory_space<vmem>>, vector<16x32xbf16>,
      %cst_133 = arith.constant dense<0.000000e+00> : vector<32xf32>
      %290 = vector.multi_reduction <add>, %287, %cst_133 [0] : vector<16x32xf32> to vector<32xf32>
      %291 = vector.shape_cast %290 : vector<32xf32> to vector<1x32xf32>
      %c0_134 = arith.constant 0 : index
      %c0_135 = arith.constant 0 : index
      %292 = vector.load %arg15[%c0_134, %c0_135] : memref<1x32xf32, #tpu.memory_space<vmem>>, vector<1x32xf32>
      tpu.vector_store %arg15[%c0_134, %c0_135], %291 {strides = array<i32>} : memref<1x32xf32, #tpu.memory_space<vmem>>, vector<1x32xf32>,
    } else {
    }
    %c8_i32 = arith.constant 8 : i32
    %3 = arith.muli %arg1, %c8_i32 : i32
    %4 = tpu.assume_multiple %3, 8 : i32
    %c0 = arith.constant 0 : index
    %5 = arith.index_cast %4 : i32 to index
    %c0_1 = arith.constant 0 : index
    %6 = vector.load %arg2[%c0, %5, %c0_1] : memref<1x16x32xbf16, #tpu.memory_space<vmem>>, vector<1x8x32xbf16>
    %7 = vector.shape_cast %6 : vector<1x8x32xbf16> to vector<8x32xbf16>
    %c0_2 = arith.constant 0 : index
    %c0_3 = arith.constant 0 : index
    %8 = vector.load %arg3[%c0_2, %c0_3] : memref<32x32xbf16, #tpu.memory_space<vmem>>, vector<32x32xbf16>
    %cst = arith.constant dense<0.000000e+00> : vector<8x32xf32>
    %9 = tpu.matmul %7, %8, %cst {dimension_numbers = #tpu.dot_dimension_numbers<[1], [0], [0], [1], [0, 0, 1, 1], [], []>} : vector<8x32xbf16>, vector<32x32xbf16>, vector<8x32xf32> -> vector<8x32xf32>
    %10 = arith.truncf %9 : vector<8x32xf32> to vector<8x32xbf16>
    %c0_4 = arith.constant 0 : index
    %c0_5 = arith.constant 0 : index
    %11 = vector.load %arg13[%c0_4, %c0_5] : memref<16x32xbf16, #tpu.memory_space<vmem>>, vector<16x32xbf16>
    %c0_6 = arith.constant 0 : index
    %c0_7 = arith.constant 0 : index
    %12 = vector.load %arg14[%c0_6, %c0_7] : memref<16x32xbf16, #tpu.memory_space<vmem>>, vector<16x32xbf16>
    %13 = vector.extract_strided_slice %10 {offsets = [0, 0], sizes = [8, 8], strides = [1, 1]} : vector<8x32xbf16> to vector<8x8xbf16>
    %14 = vector.extract_strided_slice %11 {offsets = [0, 0], sizes = [16, 8], strides = [1, 1]} : vector<16x32xbf16> to vector<16x8xbf16>
    %cst_8 = arith.constant dense<0.000000e+00> : vector<8x16xf32>
    %15 = tpu.matmul %13, %14, %cst_8 {dimension_numbers = #tpu.dot_dimension_numbers<[1], [1], [0], [0], [0, 0, 1, 0], [], []>} : vector<8x8xbf16>, vector<16x8xbf16>, vector<8x16xf32> -> vector<8x16xf32>
    %16 = vector.extract_strided_slice %10 {offsets = [0, 8], sizes = [8, 8], strides = [1, 1]} : vector<8x32xbf16> to vector<8x8xbf16>
    %17 = vector.extract_strided_slice %11 {offsets = [0, 8], sizes = [16, 8], strides = [1, 1]} : vector<16x32xbf16> to vector<16x8xbf16>
    %cst_9 = arith.constant dense<0.000000e+00> : vector<8x16xf32>
    %18 = tpu.matmul %16, %17, %cst_9 {dimension_numbers = #tpu.dot_dimension_numbers<[1], [1], [0], [0], [0, 0, 1, 0], [], []>} : vector<8x8xbf16>, vector<16x8xbf16>, vector<8x16xf32> -> vector<8x16xf32>
    %19 = vector.extract_strided_slice %10 {offsets = [0, 16], sizes = [8, 8], strides = [1, 1]} : vector<8x32xbf16> to vector<8x8xbf16>
    %20 = vector.extract_strided_slice %11 {offsets = [0, 16], sizes = [16, 8], strides = [1, 1]} : vector<16x32xbf16> to vector<16x8xbf16>
    %cst_10 = arith.constant dense<0.000000e+00> : vector<8x16xf32>
    %21 = tpu.matmul %19, %20, %cst_10 {dimension_numbers = #tpu.dot_dimension_numbers<[1], [1], [0], [0], [0, 0, 1, 0], [], []>} : vector<8x8xbf16>, vector<16x8xbf16>, vector<8x16xf32> -> vector<8x16xf32>
    %22 = vector.extract_strided_slice %10 {offsets = [0, 24], sizes = [8, 8], strides = [1, 1]} : vector<8x32xbf16> to vector<8x8xbf16>
    %23 = vector.extract_strided_slice %11 {offsets = [0, 24], sizes = [16, 8], strides = [1, 1]} : vector<16x32xbf16> to vector<16x8xbf16>
    %cst_11 = arith.constant dense<0.000000e+00> : vector<8x16xf32>
    %24 = tpu.matmul %22, %23, %cst_11 {dimension_numbers = #tpu.dot_dimension_numbers<[1], [1], [0], [0], [0, 0, 1, 0], [], []>} : vector<8x8xbf16>, vector<16x8xbf16>, vector<8x16xf32> -> vector<8x16xf32>
    %c0_12 = arith.constant 0 : index
    %c0_13 = arith.constant 0 : index
    %25 = memref.load %arg9[%c0_12, %c0_13] : memref<4x4xf32, #tpu.memory_space<smem>>
    %26 = vector.broadcast %25 : f32 to vector<8x16xf32>
    %27 = arith.mulf %15, %26 : vector<8x16xf32>
    %c0_14 = arith.constant 0 : index
    %c1 = arith.constant 1 : index
    %28 = memref.load %arg9[%c0_14, %c1] : memref<4x4xf32, #tpu.memory_space<smem>>
    %29 = vector.broadcast %28 : f32 to vector<8x16xf32>
    %30 = arith.mulf %18, %29 : vector<8x16xf32>
    %31 = arith.addf %27, %30 : vector<8x16xf32>
    %c0_15 = arith.constant 0 : index
    %c2 = arith.constant 2 : index
    %32 = memref.load %arg9[%c0_15, %c2] : memref<4x4xf32, #tpu.memory_space<smem>>
    %33 = vector.broadcast %32 : f32 to vector<8x16xf32>
    %34 = arith.mulf %21, %33 : vector<8x16xf32>
    %35 = arith.addf %31, %34 : vector<8x16xf32>
    %c0_16 = arith.constant 0 : index
    %c3 = arith.constant 3 : index
    %36 = memref.load %arg9[%c0_16, %c3] : memref<4x4xf32, #tpu.memory_space<smem>>
    %37 = vector.broadcast %36 : f32 to vector<8x16xf32>
    %38 = arith.mulf %24, %37 : vector<8x16xf32>
    %39 = arith.addf %35, %38 : vector<8x16xf32>
    %c0_17 = arith.constant 0 : index
    %40 = arith.index_cast %4 : i32 to index
    %c0_18 = arith.constant 0 : index
    %41 = vector.load %arg8[%c0_17, %40, %c0_18] : memref<4x16x16xbf16, #tpu.memory_space<vmem>>, vector<1x8x16xbf16>
    %42 = vector.shape_cast %41 : vector<1x8x16xbf16> to vector<8x16xbf16>
    %43 = arith.extf %42 : vector<8x16xbf16> to vector<8x16xf32>
    %44 = arith.addf %39, %43 : vector<8x16xf32>
    %cst_19 = arith.constant dense<0xFF800000> : vector<8xf32>
    %45 = vector.multi_reduction <maximumf>, %44, %cst_19 [1] : vector<8x16xf32> to vector<8xf32>
    %46 = vector.shape_cast %45 : vector<8xf32> to vector<8x1xf32>
    %47 = vector.broadcast %46 : vector<8x1xf32> to vector<8x16xf32>
    %48 = arith.subf %44, %47 : vector<8x16xf32>
    %49 = math.exp %48 : vector<8x16xf32>
    %cst_20 = arith.constant dense<0.000000e+00> : vector<8xf32>
    %50 = vector.multi_reduction <add>, %49, %cst_20 [1] : vector<8x16xf32> to vector<8xf32>
    %51 = vector.shape_cast %50 : vector<8xf32> to vector<8x1xf32>
    %52 = tpu.reciprocal %51 : vector<8x1xf32> -> vector<8x1xf32>
    %53 = vector.broadcast %52 : vector<8x1xf32> to vector<8x16xf32>
    %54 = arith.mulf %49, %53 : vector<8x16xf32>
    %55 = arith.truncf %54 : vector<8x16xf32> to vector<8x16xbf16>
    %c1_21 = arith.constant 1 : index
    %c0_22 = arith.constant 0 : index
    %56 = memref.load %arg9[%c1_21, %c0_22] : memref<4x4xf32, #tpu.memory_space<smem>>
    %57 = vector.broadcast %56 : f32 to vector<8x16xf32>
    %58 = arith.mulf %15, %57 : vector<8x16xf32>
    %c1_23 = arith.constant 1 : index
    %c1_24 = arith.constant 1 : index
    %59 = memref.load %arg9[%c1_23, %c1_24] : memref<4x4xf32, #tpu.memory_space<smem>>
    %60 = vector.broadcast %59 : f32 to vector<8x16xf32>
    %61 = arith.mulf %18, %60 : vector<8x16xf32>
    %62 = arith.addf %58, %61 : vector<8x16xf32>
    %c1_25 = arith.constant 1 : index
    %c2_26 = arith.constant 2 : index
    %63 = memref.load %arg9[%c1_25, %c2_26] : memref<4x4xf32, #tpu.memory_space<smem>>
    %64 = vector.broadcast %63 : f32 to vector<8x16xf32>
    %65 = arith.mulf %21, %64 : vector<8x16xf32>
    %66 = arith.addf %62, %65 : vector<8x16xf32>
    %c1_27 = arith.constant 1 : index
    %c3_28 = arith.constant 3 : index
    %67 = memref.load %arg9[%c1_27, %c3_28] : memref<4x4xf32, #tpu.memory_space<smem>>
    %68 = vector.broadcast %67 : f32 to vector<8x16xf32>
    %69 = arith.mulf %24, %68 : vector<8x16xf32>
    %70 = arith.addf %66, %69 : vector<8x16xf32>
    %c1_29 = arith.constant 1 : index
    %71 = arith.index_cast %4 : i32 to index
    %c0_30 = arith.constant 0 : index
    %72 = vector.load %arg8[%c1_29, %71, %c0_30] : memref<4x16x16xbf16, #tpu.memory_space<vmem>>, vector<1x8x16xbf16>
    %73 = vector.shape_cast %72 : vector<1x8x16xbf16> to vector<8x16xbf16>
    %74 = arith.extf %73 : vector<8x16xbf16> to vector<8x16xf32>
    %75 = arith.addf %70, %74 : vector<8x16xf32>
    %cst_31 = arith.constant dense<0xFF800000> : vector<8xf32>
    %76 = vector.multi_reduction <maximumf>, %75, %cst_31 [1] : vector<8x16xf32> to vector<8xf32>
    %77 = vector.shape_cast %76 : vector<8xf32> to vector<8x1xf32>
    %78 = vector.broadcast %77 : vector<8x1xf32> to vector<8x16xf32>
    %79 = arith.subf %75, %78 : vector<8x16xf32>
    %80 = math.exp %79 : vector<8x16xf32>
    %cst_32 = arith.constant dense<0.000000e+00> : vector<8xf32>
    %81 = vector.multi_reduction <add>, %80, %cst_32 [1] : vector<8x16xf32> to vector<8xf32>
    %82 = vector.shape_cast %81 : vector<8xf32> to vector<8x1xf32>
    %83 = tpu.reciprocal %82 : vector<8x1xf32> -> vector<8x1xf32>
    %84 = vector.broadcast %83 : vector<8x1xf32> to vector<8x16xf32>
    %85 = arith.mulf %80, %84 : vector<8x16xf32>
    %86 = arith.truncf %85 : vector<8x16xf32> to vector<8x16xbf16>
    %c2_33 = arith.constant 2 : index
    %c0_34 = arith.constant 0 : index
    %87 = memref.load %arg9[%c2_33, %c0_34] : memref<4x4xf32, #tpu.memory_space<smem>>
    %88 = vector.broadcast %87 : f32 to vector<8x16xf32>
    %89 = arith.mulf %15, %88 : vector<8x16xf32>
    %c2_35 = arith.constant 2 : index
    %c1_36 = arith.constant 1 : index
    %90 = memref.load %arg9[%c2_35, %c1_36] : memref<4x4xf32, #tpu.memory_space<smem>>
    %91 = vector.broadcast %90 : f32 to vector<8x16xf32>
    %92 = arith.mulf %18, %91 : vector<8x16xf32>
    %93 = arith.addf %89, %92 : vector<8x16xf32>
    %c2_37 = arith.constant 2 : index
    %c2_38 = arith.constant 2 : index
    %94 = memref.load %arg9[%c2_37, %c2_38] : memref<4x4xf32, #tpu.memory_space<smem>>
    %95 = vector.broadcast %94 : f32 to vector<8x16xf32>
    %96 = arith.mulf %21, %95 : vector<8x16xf32>
    %97 = arith.addf %93, %96 : vector<8x16xf32>
    %c2_39 = arith.constant 2 : index
    %c3_40 = arith.constant 3 : index
    %98 = memref.load %arg9[%c2_39, %c3_40] : memref<4x4xf32, #tpu.memory_space<smem>>
    %99 = vector.broadcast %98 : f32 to vector<8x16xf32>
    %100 = arith.mulf %24, %99 : vector<8x16xf32>
    %101 = arith.addf %97, %100 : vector<8x16xf32>
    %c2_41 = arith.constant 2 : index
    %102 = arith.index_cast %4 : i32 to index
    %c0_42 = arith.constant 0 : index
    %103 = vector.load %arg8[%c2_41, %102, %c0_42] : memref<4x16x16xbf16, #tpu.memory_space<vmem>>, vector<1x8x16xbf16>
    %104 = vector.shape_cast %103 : vector<1x8x16xbf16> to vector<8x16xbf16>
    %105 = arith.extf %104 : vector<8x16xbf16> to vector<8x16xf32>
    %106 = arith.addf %101, %105 : vector<8x16xf32>
    %cst_43 = arith.constant dense<0xFF800000> : vector<8xf32>
    %107 = vector.multi_reduction <maximumf>, %106, %cst_43 [1] : vector<8x16xf32> to vector<8xf32>
    %108 = vector.shape_cast %107 : vector<8xf32> to vector<8x1xf32>
    %109 = vector.broadcast %108 : vector<8x1xf32> to vector<8x16xf32>
    %110 = arith.subf %106, %109 : vector<8x16xf32>
    %111 = math.exp %110 : vector<8x16xf32>
    %cst_44 = arith.constant dense<0.000000e+00> : vector<8xf32>
    %112 = vector.multi_reduction <add>, %111, %cst_44 [1] : vector<8x16xf32> to vector<8xf32>
    %113 = vector.shape_cast %112 : vector<8xf32> to vector<8x1xf32>
    %114 = tpu.reciprocal %113 : vector<8x1xf32> -> vector<8x1xf32>
    %115 = vector.broadcast %114 : vector<8x1xf32> to vector<8x16xf32>
    %116 = arith.mulf %111, %115 : vector<8x16xf32>
    %117 = arith.truncf %116 : vector<8x16xf32> to vector<8x16xbf16>
    %c3_45 = arith.constant 3 : index
    %c0_46 = arith.constant 0 : index
    %118 = memref.load %arg9[%c3_45, %c0_46] : memref<4x4xf32, #tpu.memory_space<smem>>
    %119 = vector.broadcast %118 : f32 to vector<8x16xf32>
    %120 = arith.mulf %15, %119 : vector<8x16xf32>
    %c3_47 = arith.constant 3 : index
    %c1_48 = arith.constant 1 : index
    %121 = memref.load %arg9[%c3_47, %c1_48] : memref<4x4xf32, #tpu.memory_space<smem>>
    %122 = vector.broadcast %121 : f32 to vector<8x16xf32>
    %123 = arith.mulf %18, %122 : vector<8x16xf32>
    %124 = arith.addf %120, %123 : vector<8x16xf32>
    %c3_49 = arith.constant 3 : index
    %c2_50 = arith.constant 2 : index
    %125 = memref.load %arg9[%c3_49, %c2_50] : memref<4x4xf32, #tpu.memory_space<smem>>
    %126 = vector.broadcast %125 : f32 to vector<8x16xf32>
    %127 = arith.mulf %21, %126 : vector<8x16xf32>
    %128 = arith.addf %124, %127 : vector<8x16xf32>
    %c3_51 = arith.constant 3 : index
    %c3_52 = arith.constant 3 : index
    %129 = memref.load %arg9[%c3_51, %c3_52] : memref<4x4xf32, #tpu.memory_space<smem>>
    %130 = vector.broadcast %129 : f32 to vector<8x16xf32>
    %131 = arith.mulf %24, %130 : vector<8x16xf32>
    %132 = arith.addf %128, %131 : vector<8x16xf32>
    %c3_53 = arith.constant 3 : index
    %133 = arith.index_cast %4 : i32 to index
    %c0_54 = arith.constant 0 : index
    %134 = vector.load %arg8[%c3_53, %133, %c0_54] : memref<4x16x16xbf16, #tpu.memory_space<vmem>>, vector<1x8x16xbf16>
    %135 = vector.shape_cast %134 : vector<1x8x16xbf16> to vector<8x16xbf16>
    %136 = arith.extf %135 : vector<8x16xbf16> to vector<8x16xf32>
    %137 = arith.addf %132, %136 : vector<8x16xf32>
    %cst_55 = arith.constant dense<0xFF800000> : vector<8xf32>
    %138 = vector.multi_reduction <maximumf>, %137, %cst_55 [1] : vector<8x16xf32> to vector<8xf32>
    %139 = vector.shape_cast %138 : vector<8xf32> to vector<8x1xf32>
    %140 = vector.broadcast %139 : vector<8x1xf32> to vector<8x16xf32>
    %141 = arith.subf %137, %140 : vector<8x16xf32>
    %142 = math.exp %141 : vector<8x16xf32>
    %cst_56 = arith.constant dense<0.000000e+00> : vector<8xf32>
    %143 = vector.multi_reduction <add>, %142, %cst_56 [1] : vector<8x16xf32> to vector<8xf32>
    %144 = vector.shape_cast %143 : vector<8xf32> to vector<8x1xf32>
    %145 = tpu.reciprocal %144 : vector<8x1xf32> -> vector<8x1xf32>
    %146 = vector.broadcast %145 : vector<8x1xf32> to vector<8x16xf32>
    %147 = arith.mulf %142, %146 : vector<8x16xf32>
    %148 = arith.truncf %147 : vector<8x16xf32> to vector<8x16xbf16>
    %cst_57 = arith.constant 0.000000e+00 : f32
    %149 = vector.broadcast %cst_57 : f32 to vector<8x32xf32>
    %c0_58 = arith.constant 0 : index
    %c0_59 = arith.constant 0 : index
    %150 = memref.load %arg10[%c0_58, %c0_59] : memref<4x4xf32, #tpu.memory_space<smem>>
    %151 = arith.truncf %150 : f32 to bf16
    %152 = vector.broadcast %151 : bf16 to vector<8x16xbf16>
    %153 = arith.mulf %55, %152 : vector<8x16xbf16>
    %c0_60 = arith.constant 0 : index
    %c1_61 = arith.constant 1 : index
    %154 = memref.load %arg10[%c0_60, %c1_61] : memref<4x4xf32, #tpu.memory_space<smem>>
    %155 = arith.truncf %154 : f32 to bf16
    %156 = vector.broadcast %155 : bf16 to vector<8x16xbf16>
    %157 = arith.mulf %86, %156 : vector<8x16xbf16>
    %158 = arith.addf %153, %157 : vector<8x16xbf16>
    %c0_62 = arith.constant 0 : index
    %c2_63 = arith.constant 2 : index
    %159 = memref.load %arg10[%c0_62, %c2_63] : memref<4x4xf32, #tpu.memory_space<smem>>
    %160 = arith.truncf %159 : f32 to bf16
    %161 = vector.broadcast %160 : bf16 to vector<8x16xbf16>
    %162 = arith.mulf %117, %161 : vector<8x16xbf16>
    %163 = arith.addf %158, %162 : vector<8x16xbf16>
    %c0_64 = arith.constant 0 : index
    %c3_65 = arith.constant 3 : index
    %164 = memref.load %arg10[%c0_64, %c3_65] : memref<4x4xf32, #tpu.memory_space<smem>>
    %165 = arith.truncf %164 : f32 to bf16
    %166 = vector.broadcast %165 : bf16 to vector<8x16xbf16>
    %167 = arith.mulf %148, %166 : vector<8x16xbf16>
    %168 = arith.addf %163, %167 : vector<8x16xbf16>
    %169 = vector.extract_strided_slice %12 {offsets = [0, 0], sizes = [16, 8], strides = [1, 1]} : vector<16x32xbf16> to vector<16x8xbf16>
    %cst_66 = arith.constant dense<0.000000e+00> : vector<8x8xf32>
    %170 = tpu.matmul %168, %169, %cst_66 {dimension_numbers = #tpu.dot_dimension_numbers<[1], [0], [0], [1], [0, 0, 1, 1], [], []>} : vector<8x16xbf16>, vector<16x8xbf16>, vector<8x8xf32> -> vector<8x8xf32>
    %c0_67 = arith.constant 0 : index
    %171 = memref.load %arg11[%c0_67] : memref<4xf32, #tpu.memory_space<smem>>
    %c0_68 = arith.constant 0 : index
    %c0_69 = arith.constant 0 : index
    %172 = vector.load %arg15[%c0_68, %c0_69] : memref<1x32xf32, #tpu.memory_space<vmem>>, vector<1x8xf32>
    %173 = vector.broadcast %171 : f32 to vector<1x8xf32>
    %174 = arith.mulf %173, %172 : vector<1x8xf32>
    %175 = vector.broadcast %174 : vector<1x8xf32> to vector<8x8xf32>
    %176 = arith.addf %170, %175 : vector<8x8xf32>
    %177 = arith.truncf %176 : vector<8x8xf32> to vector<8x8xbf16>
    %c0_70 = arith.constant 0 : index
    %c0_71 = arith.constant 0 : index
    %178 = vector.load %arg6[%c0_70, %c0_71] : memref<32x32xbf16, #tpu.memory_space<vmem>>, vector<8x32xbf16>
    %cst_72 = arith.constant dense<0.000000e+00> : vector<8x32xf32>
    %179 = tpu.matmul %177, %178, %cst_72 {dimension_numbers = #tpu.dot_dimension_numbers<[1], [0], [0], [1], [0, 0, 1, 1], [], []>} : vector<8x8xbf16>, vector<8x32xbf16>, vector<8x32xf32> -> vector<8x32xf32>
    %180 = arith.addf %149, %179 : vector<8x32xf32>
    %c1_73 = arith.constant 1 : index
    %c0_74 = arith.constant 0 : index
    %181 = memref.load %arg10[%c1_73, %c0_74] : memref<4x4xf32, #tpu.memory_space<smem>>
    %182 = arith.truncf %181 : f32 to bf16
    %183 = vector.broadcast %182 : bf16 to vector<8x16xbf16>
    %184 = arith.mulf %55, %183 : vector<8x16xbf16>
    %c1_75 = arith.constant 1 : index
    %c1_76 = arith.constant 1 : index
    %185 = memref.load %arg10[%c1_75, %c1_76] : memref<4x4xf32, #tpu.memory_space<smem>>
    %186 = arith.truncf %185 : f32 to bf16
    %187 = vector.broadcast %186 : bf16 to vector<8x16xbf16>
    %188 = arith.mulf %86, %187 : vector<8x16xbf16>
    %189 = arith.addf %184, %188 : vector<8x16xbf16>
    %c1_77 = arith.constant 1 : index
    %c2_78 = arith.constant 2 : index
    %190 = memref.load %arg10[%c1_77, %c2_78] : memref<4x4xf32, #tpu.memory_space<smem>>
    %191 = arith.truncf %190 : f32 to bf16
    %192 = vector.broadcast %191 : bf16 to vector<8x16xbf16>
    %193 = arith.mulf %117, %192 : vector<8x16xbf16>
    %194 = arith.addf %189, %193 : vector<8x16xbf16>
    %c1_79 = arith.constant 1 : index
    %c3_80 = arith.constant 3 : index
    %195 = memref.load %arg10[%c1_79, %c3_80] : memref<4x4xf32, #tpu.memory_space<smem>>
    %196 = arith.truncf %195 : f32 to bf16
    %197 = vector.broadcast %196 : bf16 to vector<8x16xbf16>
    %198 = arith.mulf %148, %197 : vector<8x16xbf16>
    %199 = arith.addf %194, %198 : vector<8x16xbf16>
    %200 = vector.extract_strided_slice %12 {offsets = [0, 8], sizes = [16, 8], strides = [1, 1]} : vector<16x32xbf16> to vector<16x8xbf16>
    %cst_81 = arith.constant dense<0.000000e+00> : vector<8x8xf32>
    %201 = tpu.matmul %199, %200, %cst_81 {dimension_numbers = #tpu.dot_dimension_numbers<[1], [0], [0], [1], [0, 0, 1, 1], [], []>} : vector<8x16xbf16>, vector<16x8xbf16>, vector<8x8xf32> -> vector<8x8xf32>
    %c1_82 = arith.constant 1 : index
    %202 = memref.load %arg11[%c1_82] : memref<4xf32, #tpu.memory_space<smem>>
    %c0_83 = arith.constant 0 : index
    %c8 = arith.constant 8 : index
    %203 = vector.load %arg15[%c0_83, %c8] : memref<1x32xf32, #tpu.memory_space<vmem>>, vector<1x8xf32>
    %204 = vector.broadcast %202 : f32 to vector<1x8xf32>
    %205 = arith.mulf %204, %203 : vector<1x8xf32>
    %206 = vector.broadcast %205 : vector<1x8xf32> to vector<8x8xf32>
    %207 = arith.addf %201, %206 : vector<8x8xf32>
    %208 = arith.truncf %207 : vector<8x8xf32> to vector<8x8xbf16>
    %c8_84 = arith.constant 8 : index
    %c0_85 = arith.constant 0 : index
    %209 = vector.load %arg6[%c8_84, %c0_85] : memref<32x32xbf16, #tpu.memory_space<vmem>>, vector<8x32xbf16>
    %cst_86 = arith.constant dense<0.000000e+00> : vector<8x32xf32>
    %210 = tpu.matmul %208, %209, %cst_86 {dimension_numbers = #tpu.dot_dimension_numbers<[1], [0], [0], [1], [0, 0, 1, 1], [], []>} : vector<8x8xbf16>, vector<8x32xbf16>, vector<8x32xf32> -> vector<8x32xf32>
    %211 = arith.addf %180, %210 : vector<8x32xf32>
    %c2_87 = arith.constant 2 : index
    %c0_88 = arith.constant 0 : index
    %212 = memref.load %arg10[%c2_87, %c0_88] : memref<4x4xf32, #tpu.memory_space<smem>>
    %213 = arith.truncf %212 : f32 to bf16
    %214 = vector.broadcast %213 : bf16 to vector<8x16xbf16>
    %215 = arith.mulf %55, %214 : vector<8x16xbf16>
    %c2_89 = arith.constant 2 : index
    %c1_90 = arith.constant 1 : index
    %216 = memref.load %arg10[%c2_89, %c1_90] : memref<4x4xf32, #tpu.memory_space<smem>>
    %217 = arith.truncf %216 : f32 to bf16
    %218 = vector.broadcast %217 : bf16 to vector<8x16xbf16>
    %219 = arith.mulf %86, %218 : vector<8x16xbf16>
    %220 = arith.addf %215, %219 : vector<8x16xbf16>
    %c2_91 = arith.constant 2 : index
    %c2_92 = arith.constant 2 : index
    %221 = memref.load %arg10[%c2_91, %c2_92] : memref<4x4xf32, #tpu.memory_space<smem>>
    %222 = arith.truncf %221 : f32 to bf16
    %223 = vector.broadcast %222 : bf16 to vector<8x16xbf16>
    %224 = arith.mulf %117, %223 : vector<8x16xbf16>
    %225 = arith.addf %220, %224 : vector<8x16xbf16>
    %c2_93 = arith.constant 2 : index
    %c3_94 = arith.constant 3 : index
    %226 = memref.load %arg10[%c2_93, %c3_94] : memref<4x4xf32, #tpu.memory_space<smem>>
    %227 = arith.truncf %226 : f32 to bf16
    %228 = vector.broadcast %227 : bf16 to vector<8x16xbf16>
    %229 = arith.mulf %148, %228 : vector<8x16xbf16>
    %230 = arith.addf %225, %229 : vector<8x16xbf16>
    %231 = vector.extract_strided_slice %12 {offsets = [0, 16], sizes = [16, 8], strides = [1, 1]} : vector<16x32xbf16> to vector<16x8xbf16>
    %cst_95 = arith.constant dense<0.000000e+00> : vector<8x8xf32>
    %232 = tpu.matmul %230, %231, %cst_95 {dimension_numbers = #tpu.dot_dimension_numbers<[1], [0], [0], [1], [0, 0, 1, 1], [], []>} : vector<8x16xbf16>, vector<16x8xbf16>, vector<8x8xf32> -> vector<8x8xf32>
    %c2_96 = arith.constant 2 : index
    %233 = memref.load %arg11[%c2_96] : memref<4xf32, #tpu.memory_space<smem>>
    %c0_97 = arith.constant 0 : index
    %c16 = arith.constant 16 : index
    %234 = vector.load %arg15[%c0_97, %c16] : memref<1x32xf32, #tpu.memory_space<vmem>>, vector<1x8xf32>
    %235 = vector.broadcast %233 : f32 to vector<1x8xf32>
    %236 = arith.mulf %235, %234 : vector<1x8xf32>
    %237 = vector.broadcast %236 : vector<1x8xf32> to vector<8x8xf32>
    %238 = arith.addf %232, %237 : vector<8x8xf32>
    %239 = arith.truncf %238 : vector<8x8xf32> to vector<8x8xbf16>
    %c16_98 = arith.constant 16 : index
    %c0_99 = arith.constant 0 : index
    %240 = vector.load %arg6[%c16_98, %c0_99] : memref<32x32xbf16, #tpu.memory_space<vmem>>, vector<8x32xbf16>
    %cst_100 = arith.constant dense<0.000000e+00> : vector<8x32xf32>
    %241 = tpu.matmul %239, %240, %cst_100 {dimension_numbers = #tpu.dot_dimension_numbers<[1], [0], [0], [1], [0, 0, 1, 1], [], []>} : vector<8x8xbf16>, vector<8x32xbf16>, vector<8x32xf32> -> vector<8x32xf32>
    %242 = arith.addf %211, %241 : vector<8x32xf32>
    %c3_101 = arith.constant 3 : index
    %c0_102 = arith.constant 0 : index
    %243 = memref.load %arg10[%c3_101, %c0_102] : memref<4x4xf32, #tpu.memory_space<smem>>
    %244 = arith.truncf %243 : f32 to bf16
    %245 = vector.broadcast %244 : bf16 to vector<8x16xbf16>
    %246 = arith.mulf %55, %245 : vector<8x16xbf16>
    %c3_103 = arith.constant 3 : index
    %c1_104 = arith.constant 1 : index
    %247 = memref.load %arg10[%c3_103, %c1_104] : memref<4x4xf32, #tpu.memory_space<smem>>
    %248 = arith.truncf %247 : f32 to bf16
    %249 = vector.broadcast %248 : bf16 to vector<8x16xbf16>
    %250 = arith.mulf %86, %249 : vector<8x16xbf16>
    %251 = arith.addf %246, %250 : vector<8x16xbf16>
    %c3_105 = arith.constant 3 : index
    %c2_106 = arith.constant 2 : index
    %252 = memref.load %arg10[%c3_105, %c2_106] : memref<4x4xf32, #tpu.memory_space<smem>>
    %253 = arith.truncf %252 : f32 to bf16
    %254 = vector.broadcast %253 : bf16 to vector<8x16xbf16>
    %255 = arith.mulf %117, %254 : vector<8x16xbf16>
    %256 = arith.addf %251, %255 : vector<8x16xbf16>
    %c3_107 = arith.constant 3 : index
    %c3_108 = arith.constant 3 : index
    %257 = memref.load %arg10[%c3_107, %c3_108] : memref<4x4xf32, #tpu.memory_space<smem>>
    %258 = arith.truncf %257 : f32 to bf16
    %259 = vector.broadcast %258 : bf16 to vector<8x16xbf16>
    %260 = arith.mulf %148, %259 : vector<8x16xbf16>
    %261 = arith.addf %256, %260 : vector<8x16xbf16>
    %262 = vector.extract_strided_slice %12 {offsets = [0, 24], sizes = [16, 8], strides = [1, 1]} : vector<16x32xbf16> to vector<16x8xbf16>
    %cst_109 = arith.constant dense<0.000000e+00> : vector<8x8xf32>
    %263 = tpu.matmul %261, %262, %cst_109 {dimension_numbers = #tpu.dot_dimension_numbers<[1], [0], [0], [1], [0, 0, 1, 1], [], []>} : vector<8x16xbf16>, vector<16x8xbf16>, vector<8x8xf32> -> vector<8x8xf32>
    %c3_110 = arith.constant 3 : index
    %264 = memref.load %arg11[%c3_110] : memref<4xf32, #tpu.memory_space<smem>>
    %c0_111 = arith.constant 0 : index
    %c24 = arith.constant 24 : index
    %265 = vector.load %arg15[%c0_111, %c24] : memref<1x32xf32, #tpu.memory_space<vmem>>, vector<1x8xf32>
    %266 = vector.broadcast %264 : f32 to vector<1x8xf32>
    %267 = arith.mulf %266, %265 : vector<1x8xf32>
    %268 = vector.broadcast %267 : vector<1x8xf32> to vector<8x8xf32>
    %269 = arith.addf %263, %268 : vector<8x8xf32>
    %270 = arith.truncf %269 : vector<8x8xf32> to vector<8x8xbf16>
    %c24_112 = arith.constant 24 : index
    %c0_113 = arith.constant 0 : index
    %271 = vector.load %arg6[%c24_112, %c0_113] : memref<32x32xbf16, #tpu.memory_space<vmem>>, vector<8x32xbf16>
    %cst_114 = arith.constant dense<0.000000e+00> : vector<8x32xf32>
    %272 = tpu.matmul %270, %271, %cst_114 {dimension_numbers = #tpu.dot_dimension_numbers<[1], [0], [0], [1], [0, 0, 1, 1], [], []>} : vector<8x8xbf16>, vector<8x32xbf16>, vector<8x32xf32> -> vector<8x32xf32>
    %273 = arith.addf %242, %272 : vector<8x32xf32>
    %c0_115 = arith.constant 0 : index
    %c0_116 = arith.constant 0 : index
    %274 = vector.load %arg7[%c0_115, %c0_116] : memref<1x32xf32, #tpu.memory_space<vmem>>, vector<1x32xf32>
    %275 = vector.broadcast %274 : vector<1x32xf32> to vector<8x32xf32>
    %276 = arith.addf %273, %275 : vector<8x32xf32>
    %c0_117 = arith.constant 0 : index
    %c0_118 = arith.constant 0 : index
    %c0_119 = arith.constant 0 : index
    %277 = vector.load %arg12[%c0_117, %c0_118, %c0_119] : memref<1x8x32xf32, #tpu.memory_space<vmem>>, vector<1x8x32xf32>
    %278 = vector.shape_cast %277 : vector<1x8x32xf32> to vector<8x32xf32>
    %279 = vector.shape_cast %276 : vector<8x32xf32> to vector<1x8x32xf32>
    tpu.vector_store %arg12[%c0_117, %c0_118, %c0_119], %279 {strides = array<i32>} : memref<1x8x32xf32, #tpu.memory_space<vmem>>, vector<1x8x32xf32>,
    return
  }
  func.func @transform_0(%arg0: i32, %arg1: i32) -> (i32, i32, i32) {
    %c0_i32 = arith.constant 0 : i32
    %c0_i32_0 = arith.constant 0 : i32
    %c0_i32_1 = arith.constant 0 : i32
    return %arg0, %c0_i32, %c0_i32_0 : i32, i32, i32
  }
  func.func @transform_1(%arg0: i32, %arg1: i32) -> (i32, i32) {
    %c0_i32 = arith.constant 0 : i32
    %c0_i32_0 = arith.constant 0 : i32
    %c0_i32_1 = arith.constant 0 : i32
    return %c0_i32, %c0_i32_0 : i32, i32
  }
  func.func @transform_2(%arg0: i32, %arg1: i32) -> (i32, i32) {
    %c0_i32 = arith.constant 0 : i32
    %c0_i32_0 = arith.constant 0 : i32
    %c0_i32_1 = arith.constant 0 : i32
    return %c0_i32, %c0_i32_0 : i32, i32
  }
  func.func @transform_3(%arg0: i32, %arg1: i32) -> (i32, i32) {
    %c0_i32 = arith.constant 0 : i32
    %c0_i32_0 = arith.constant 0 : i32
    %c0_i32_1 = arith.constant 0 : i32
    return %c0_i32, %c0_i32_0 : i32, i32
  }
  func.func @transform_4(%arg0: i32, %arg1: i32) -> (i32, i32) {
    %c0_i32 = arith.constant 0 : i32
    %c0_i32_0 = arith.constant 0 : i32
    %c0_i32_1 = arith.constant 0 : i32
    return %c0_i32, %c0_i32_0 : i32, i32
  }
  func.func @transform_5(%arg0: i32, %arg1: i32) -> (i32, i32) {
    %c0_i32 = arith.constant 0 : i32
    %c0_i32_0 = arith.constant 0 : i32
    %c0_i32_1 = arith.constant 0 : i32
    return %c0_i32, %c0_i32_0 : i32, i32
  }
  func.func @transform_6(%arg0: i32, %arg1: i32) -> (i32, i32, i32) {
    %c0_i32 = arith.constant 0 : i32
    %c0_i32_0 = arith.constant 0 : i32
    %c0_i32_1 = arith.constant 0 : i32
    %c0_i32_2 = arith.constant 0 : i32
    return %c0_i32, %c0_i32_0, %c0_i32_1 : i32, i32, i32
  }
  func.func @transform_7(%arg0: i32, %arg1: i32) -> (i32, i32) {
    %c0_i32 = arith.constant 0 : i32
    %c0_i32_0 = arith.constant 0 : i32
    %c0_i32_1 = arith.constant 0 : i32
    return %c0_i32, %c0_i32_0 : i32, i32
  }
  func.func @transform_8(%arg0: i32, %arg1: i32) -> (i32, i32) {
    %c0_i32 = arith.constant 0 : i32
    %c0_i32_0 = arith.constant 0 : i32
    %c0_i32_1 = arith.constant 0 : i32
    return %c0_i32, %c0_i32_0 : i32, i32
  }
  func.func @transform_9(%arg0: i32, %arg1: i32) -> i32 {
    %c0_i32 = arith.constant 0 : i32
    %c0_i32_0 = arith.constant 0 : i32
    return %c0_i32 : i32
  }
  func.func @transform_10(%arg0: i32, %arg1: i32) -> (i32, i32, i32) {
    %c0_i32 = arith.constant 0 : i32
    %c0_i32_0 = arith.constant 0 : i32
    return %arg0, %arg1, %c0_i32 : i32, i32, i32
  }
}

</mosaic_0001>

<bundles_post_ra>
// kernel: tpu_custom_call.1
= control target key start
LH: loop header
LB: loop body
LE: loop exit
PB: predicated region body
PF: predicated region fallthrough
CT: control target
= control target key end

     0   :  { %s3692_s0 = inlined_call_operand.hbm [shape: bf16[2,16,32], index: 0, kind: input, shape index: {}]   ;;  %s3693_s1 = inlined_call_operand.hbm [shape: bf16[32,32], index: 1, kind: input, shape index: {}]   ;;  %s3694_s2 = inlined_call_operand.hbm [shape: bf16[32,32], index: 2, kind: input, shape index: {}]   ;;  %s3695_s3 = inlined_call_operand.hbm [shape: bf16[32,32], index: 3, kind: input, shape index: {}]   ;;  %s3696_s4 = inlined_call_operand.hbm [shape: bf16[32,32], index: 4, kind: input, shape index: {}]   ;;  %s3697_s5 = inlined_call_operand.hbm [shape: f32[1,32], index: 5, kind: input, shape index: {}]   ;;  %s3698_s6 = inlined_call_operand.hbm [shape: bf16[4,16,16], index: 6, kind: input, shape index: {}]   ;;  %s3699_s7 = inlined_call_operand.hbm [shape: f32[4,4], index: 7, kind: input, shape index: {}]   ;;  %s3700_s8 = inlined_call_operand.hbm [shape: f32[4,4], index: 8, kind: input, shape index: {}]   ;;  %s3701_s9 = inlined_call_operand.hbm [shape: f32[4], index: 9, kind: input, shape index: {}]   ;;  %s3702_s10 = inlined_call_operand.hbm [shape: f32[2,16,32], index: 10, kind: output, shape index: {}]  }
   0x1   :  { %3741 = sst [smem:[#allocation49_spill]] %s3692_s0 }
   0x2   :  { %3742 = sst [smem:[#allocation50_spill]] %s3693_s1 }
   0x3   :  { %3743 = sst [smem:[#allocation51_spill]] %s3694_s2 }
   0x4   :  { %3744 = sst [smem:[#allocation52_spill]] %s3695_s3 }
   0x5   :  { %3745 = sst [smem:[#allocation53_spill]] %s3696_s4 }
   0x6   :  { %3746 = sst [smem:[#allocation54_spill]] %s3697_s5 }
   0x7   :  { %3747 = sst [smem:[#allocation55_spill]] %s3698_s6 }
   0x8   :  { %3748 = sst [smem:[#allocation56_spill]] %s3699_s7 }
   0x9   :  { %3749 = sst [smem:[#allocation57_spill]] %s3700_s8 }
   0xa   :  { %3750 = sst [smem:[#allocation58_spill]] %s3701_s9 }
   0xb   :  { %3751 = sst [smem:[#allocation59_spill]] %s3702_s10 }
   0xc   :  { %15 = vsyncpa [#allocation6], 0 }
   0xd   :  { %17 = vsyncpa [#allocation6 + $0x1], 0 }
   0xe   :  { %18 = vsyncpa [#allocation10], 0 }
   0xf   :  { %19 = vsyncpa [#allocation13], 0 }
  0x10   :  { %20 = vsyncpa [#allocation16], 0 }
  0x11   :  { %21 = vsyncpa [#allocation8], 0 }
  0x12   :  { %22 = vsyncpa [#allocation20], 0 }
  0x13   :  { %23 = vsyncpa [#allocation7], 0 }
  0x14   :  { %25 = vsyncpa [#allocation7 + $0x1], 0  ;;  %s2862_s13 = smov 0   ;;  %s2864_s14 = smov 0  }
  0x15   :  { %s2866_s15 = smov 0   ;;  %s2868_s16 = smov 0  }
  0x16   :  { %s2870_s17 = smov 0   ;;  %s2872_s18 = smov 0  }
  0x17   :  { %s2874_s19 = smov 0   ;;  %s2876_s20 = smov 0  }
  0x18   :  { %s2878_s21 = smov 0   ;;  %s2880_s22 = smov 0  }
  0x19   :  { %s2882_s23 = smov 0  }
  0x1a LB: > { %3752 = sst [smem:[#allocation30_spill]] %s2745_s13  ;;  %s3703_s24 = sadd.s32 4294967295, %s2785_s23   ;;  %s2785_s23 = sphi %s2882_s23, %s31_s23   ;;  %s2781_s22 = sphi %s2880_s22, %s3834_s22   ;;  %s2777_s21 = sphi %s2878_s21, %s3833_s21   ;;  %s2773_s20 = sphi %s2876_s20, %s3832_s20   ;;  %s2769_s19 = sphi %s2874_s19, %s3831_s19   ;;  %s2765_s18 = sphi %s2872_s18, %s3830_s18   ;;  %s2761_s17 = sphi %s2870_s17, %s3829_s17   ;;  %s2757_s16 = sphi %s2868_s16, %s3828_s16   ;;  %s2753_s15 = sphi %s2866_s15, %s3827_s15   ;;  %s2749_s14 = sphi %s2864_s14, %s3826_s14   ;;  %s2745_s13 = sphi %s2862_s13, %s3825_s13  }
  0x1b   : > { %3753 = sst [smem:[#allocation31_spill]] %s2749_s14  ;;  %p1954_p0 = scmp.ge.s32.totalorder %s2785_s23, 1 }
  0x1c   : > { %3754 = sst [smem:[#allocation32_spill]] %s2753_s15  ;;  %p2921_p1 = scmp.eq.s32.totalorder %s3703_s24, 0 }
  0x1d   : > { %3755 = sst [smem:[#allocation33_spill]] %s2761_s17  ;;  %p291_p2 = scmp.lt.s32.totalorder %s2785_s23, 5 }
  0x1e   : > { %3756 = sst [smem:[#allocation34_spill]] %s2765_s18  ;;  %s2787_s27 = smov [#allocation9]  }
  0x1f   : > { %3757 = sst [smem:[#allocation35_spill]] %s2769_s19  ;;  %p2926_p3 = pnand %p1954_p0, %p291_p2 }
  0x20   : > { %3758 = sst [smem:[#allocation36_spill]] %s2773_s20  ;;  %s303_s28 = sshll.u32 %s2787_s27, 4  ;;  %s2930_s28 = int_to_ptr.vmem [resolvable:$true] %s303_s28 }
  0x21   : > { %3759 = sst [smem:[#allocation37_spill]] %s2777_s21  ;;  %p2221_p4 = pneg %p2926_p3 }
  0x22   : > { %3760 = sst [smem:[#allocation38_spill]] %s2781_s22  ;;  %s2788_s30 = smov [#allocation12]  }
  0x23   : > { %3761 = sst [smem:[#allocation39_spill]] %s2785_s23  ;;  %p2936_p5 = pnand %p2221_p4, %p2921_p1 }
  0x24   : > { %s3762_s25 = scalar_select %p2921_p1, 1, 0 }
  0x25   : > { %s3764_s26 = scalar_select %p2926_p3, 1, 0 }
  0x26   : > { %3763 = sst [smem:[#allocation40_spill]] %s3762_s25  ;;  %s329_s11 = sshll.u32 %s2788_s30, 4  ;;  %s2940_s11 = int_to_ptr.vmem [resolvable:$true] %s329_s11 }
  0x27   : > { %3765 = sst [smem:[#allocation41_spill]] %s3764_s26  ;;  %s2789_s12 = smov [#allocation15]  }
  0x28   : > { %s2942_s24 = sshll.u32 %s2789_s12, 4  ;;  %s3767_s1 = sld [smem:[#allocation50_spill]]  ;;  %s357_s24 = int_to_ptr.vmem [resolvable:$true] %s2942_s24 }
  0x29   : > { %p2952_p7 = pneg %p2936_p5 }
  0x2e   : > { %s2406_s27 = scalar_lea.hbm %s3767_s1, 256 }
  0x2f   : > { %p2407_p6 = scmp.ne.s32.totalorder %s3767_s1, %s2406_s27  ;;  %p2413_p10 = scmp.lt.u32.totalorder %s2406_s27, %s3767_s1 }
  0x31   : > { %p2409_p8 = pnand %p2952_p7, %p2407_p6 }
  0x33   : > { %p2410_p9 = pneg %p2409_p8 }
  0x35   : > { %p2415_p11 = pnand %p2413_p10, %p2410_p9 }
  0x37   : > { %2418 = shalt.err (!%p2415_p11)
}
  0x38   : > { %s2419_s10 = scalar_lea.vmem %s2930_s28, 256  ;;  %p2427_p2 = scmp.lt.s32.totalorder %s2930_s28, %s2930_s28 }
  0x39   : > { %p2420_p12 = scmp.ne.s32.totalorder %s2930_s28, %s2419_s10  ;;  %p2428_p4 = scmp.lt.s32.totalorder %s2419_s10, %s2419_s10 }
  0x3b   : > { %p2422_p13 = pnand %p2420_p12, %p2952_p7  ;;  %p2429_p6 = por %p2428_p4, %p2427_p2 }
  0x3d   : > { %p2423_p0 = pneg %p2422_p13 }
  0x3f   : > { %p2430_p8 = pnand %p2429_p6, %p2423_p0 }
  0x41   : > { %2433 = shalt.err (!%p2430_p8)
}
  0x42   : > { %s3716_s19 = smov 64   ;;  %s3717_s20 = smov 4  }
  0x43   : > { %2224 = dma.hbm_to_vmem [thread:$0]  (!%p2936_p5), %s3767_s1, 256, %s2930_s28, [#allocation10], %s3716_s19, %s3716_s19, %s3717_s20  }
  0x44   : > { %s3769_s3 = sld [smem:[#allocation52_spill]] }
  0x4a   : > { %s2434_s10 = scalar_lea.hbm %s3769_s3, 256 }
  0x4b   : > { %p2435_p9 = scmp.ne.s32.totalorder %s3769_s3, %s2434_s10  ;;  %p2441_p12 = scmp.lt.u32.totalorder %s2434_s10, %s3769_s3 }
  0x4d   : > { %p2437_p10 = pnand %p2435_p9, %p2952_p7 }
  0x4f   : > { %p2438_p11 = pneg %p2437_p10 }
  0x51   : > { %p2443_p13 = pnand %p2441_p12, %p2438_p11 }
  0x53   : > { %2446 = shalt.err (!%p2443_p13)
}
  0x54   : > { %s2447_s28 = scalar_lea.vmem %s2940_s11, 256  ;;  %p2455_p6 = scmp.lt.s32.totalorder %s2940_s11, %s2940_s11 }
  0x55   : > { %p2448_p0 = scmp.ne.s32.totalorder %s2940_s11, %s2447_s28  ;;  %p2456_p8 = scmp.lt.s32.totalorder %s2447_s28, %s2447_s28 }
  0x57   : > { %p2450_p2 = pnand %p2448_p0, %p2952_p7  ;;  %p2457_p9 = por %p2456_p8, %p2455_p6 }
  0x59   : > { %p2451_p4 = pneg %p2450_p2 }
  0x5b   : > { %p2458_p10 = pnand %p2457_p9, %p2451_p4 }
  0x5d   : > { %2461 = shalt.err (!%p2458_p10)
}
  0x5e   : > { %2230 = dma.hbm_to_vmem [thread:$0]  (!%p2936_p5), %s3769_s3, 256, %s2940_s11, [#allocation13], %s3716_s19, %s3716_s19, %s3717_s20  }
  0x5f   : > { %s3770_s5 = sld [smem:[#allocation54_spill]] }
  0x65   : > { %s2462_s26 = scalar_lea.hbm %s3770_s5, 16 }
  0x66   : > { %p2463_p11 = scmp.ne.s32.totalorder %s3770_s5, %s2462_s26  ;;  %p2469_p0 = scmp.lt.u32.totalorder %s2462_s26, %s3770_s5 }
  0x68   : > { %p2465_p12 = pnand %p2463_p11, %p2952_p7 }
  0x6a   : > { %p2466_p13 = pneg %p2465_p12 }
  0x6c   : > { %p2471_p2 = pnand %p2469_p0, %p2466_p13 }
  0x6e   : > { %2474 = shalt.err (!%p2471_p2)
}
  0x6f   : > { %s2475_s28 = scalar_lea.vmem %s357_s24, 16  ;;  %s2482_s11 = scalar_lea.vmem %s357_s24, 32 }
  0x70   : > { %p2476_p4 = scmp.ne.s32.totalorder %s357_s24, %s2475_s28  ;;  %p2483_p9 = scmp.lt.s32.totalorder %s357_s24, %s357_s24 }
  0x71   : > { %p2484_p10 = scmp.lt.s32.totalorder %s2482_s11, %s2475_s28 }
  0x72   : > { %p2478_p6 = pnand %p2476_p4, %p2952_p7 }
  0x73   : > { %p2485_p3 = por %p2484_p10, %p2483_p9 }
  0x74   : > { %p2479_p8 = pneg %p2478_p6 }
  0x76   : > { %p2486_p1 = pnand %p2485_p3, %p2479_p8 }
  0x78   : > { %2489 = shalt.err (!%p2486_p1)
}
  0x79   : > { %2236 = dma.hbm_to_vmem [thread:$0]  (!%p2936_p5), %s3770_s5, 16, %s357_s24, [#allocation16]  }
  0x7a   : > { %s3771_s8 = sld [smem:[#allocation57_spill]] }
  0x80   : > { %s2490_s26 = scalar_lea.hbm %s3771_s8, 64 }
  0x81   : > { %p2491_p11 = scmp.ne.s32.totalorder %s3771_s8, %s2490_s26  ;;  %p2497_p1 = scmp.lt.u32.totalorder %s2490_s26, %s3771_s8 }
  0x83   : > { %p2493_p12 = pnand %p2491_p11, %p2952_p7 }
  0x85   : > { %p2494_p13 = pneg %p2493_p12 }
  0x87   : > { %p2499_p3 = pnand %p2497_p1, %p2494_p13 }
  0x89   : > { %2502 = shalt.err (!%p2499_p3)
}
  0x8a   : > { %s2792_s28 = smov [#allocation19]   ;;  %s2793_s13 = smov [#allocation11]  }
  0x8b   : > { %2245 = dma.hbm_to_smem (!%p2936_p5), %s3771_s8, 64, %s2792_s28, [#allocation20]  }
  0x8c   : > { %s316_s14 = sshll.u32 %s2793_s13, 4  ;;  %s2794_s15 = smov [#allocation14]   ;;  %s317_s14 = int_to_ptr.vmem [resolvable:$true] %s316_s14 }
  0x8d   : > { %s342_s25 = sshll.u32 %s2794_s15, 4  ;;  %s3772_s2 = sld [smem:[#allocation51_spill]]  ;;  %s3037_s25 = int_to_ptr.vmem [resolvable:$true] %s342_s25 }
  0x93   : > { %s2503_s26 = scalar_lea.hbm %s3772_s2, 256 }
  0x94   : > { %p2504_p0 = scmp.ne.s32.totalorder %s3772_s2, %s2503_s26  ;;  %p2510_p6 = scmp.lt.u32.totalorder %s2503_s26, %s3772_s2 }
  0x96   : > { %p2506_p2 = pnand %p2504_p0, %p2952_p7 }
  0x98   : > { %p2507_p4 = pneg %p2506_p2 }
  0x9a   : > { %p2512_p8 = pnand %p2510_p6, %p2507_p4 }
  0x9c   : > { %2515 = shalt.err (!%p2512_p8)
}
  0x9d   : > { %s2516_s11 = scalar_lea.vmem %s317_s14, 256  ;;  %p2524_p12 = scmp.lt.s32.totalorder %s317_s14, %s317_s14 }
  0x9e   : > { %p2517_p9 = scmp.ne.s32.totalorder %s317_s14, %s2516_s11  ;;  %p2525_p13 = scmp.lt.s32.totalorder %s2516_s11, %s2516_s11 }
  0xa0   : > { %p2519_p10 = pnand %p2517_p9, %p2952_p7  ;;  %p2526_p1 = por %p2525_p13, %p2524_p12 }
  0xa2   : > { %p2520_p11 = pneg %p2519_p10 }
  0xa4   : > { %p2527_p3 = pnand %p2526_p1, %p2520_p11 }
  0xa6   : > { %2530 = shalt.err (!%p2527_p3)
}
  0xa7   : > { %2227 = dma.hbm_to_vmem [thread:$0]  (!%p2936_p5), %s3772_s2, 256, %s317_s14, [#allocation10], %s3716_s19, %s3716_s19, %s3717_s20  }
  0xa8   : > { %s3773_s4 = sld [smem:[#allocation53_spill]] }
  0xae   : > { %s2531_s26 = scalar_lea.hbm %s3773_s4, 256 }
  0xaf   : > { %p2532_p0 = scmp.ne.s32.totalorder %s3773_s4, %s2531_s26  ;;  %p2538_p6 = scmp.lt.u32.totalorder %s2531_s26, %s3773_s4 }
  0xb1   : > { %p2534_p2 = pnand %p2532_p0, %p2952_p7 }
  0xb3   : > { %p2535_p4 = pneg %p2534_p2 }
  0xb5   : > { %p2540_p8 = pnand %p2538_p6, %p2535_p4 }
  0xb7   : > { %2543 = shalt.err (!%p2540_p8)
}
  0xb8   : > { %s2544_s14 = scalar_lea.vmem %s3037_s25, 256  ;;  %p2552_p12 = scmp.lt.s32.totalorder %s3037_s25, %s3037_s25 }
  0xb9   : > { %p2545_p9 = scmp.ne.s32.totalorder %s3037_s25, %s2544_s14  ;;  %p2553_p13 = scmp.lt.s32.totalorder %s2544_s14, %s2544_s14 }
  0xbb   : > { %p2547_p10 = pnand %p2545_p9, %p2952_p7  ;;  %p2554_p1 = por %p2553_p13, %p2552_p12 }
  0xbd   : > { %p2548_p11 = pneg %p2547_p10 }
  0xbf   : > { %p2555_p3 = pnand %p2554_p1, %p2548_p11 }
  0xc1   : > { %2558 = shalt.err (!%p2555_p3)
}
  0xc2   : > { %2233 = dma.hbm_to_vmem [thread:$0]  (!%p2936_p5), %s3773_s4, 256, %s3037_s25, [#allocation13], %s3716_s19, %s3716_s19, %s3717_s20  }
  0xc3   : > { %s2795_s15 = smov [#allocation17]   ;;  %s3774_s6 = sld [smem:[#allocation55_spill]] }
  0xc4   : > { %s366_s27 = sshll.u32 %s2795_s15, 4  ;;  %s367_s27 = int_to_ptr.vmem [resolvable:$true] %s366_s27 }
  0xc9   : > { %s2559_s12 = scalar_lea.hbm %s3774_s6, 512 }
  0xca   : > { %p2560_p0 = scmp.ne.s32.totalorder %s3774_s6, %s2559_s12  ;;  %p2566_p6 = scmp.lt.u32.totalorder %s2559_s12, %s3774_s6 }
  0xcc   : > { %p2562_p2 = pnand %p2560_p0, %p2952_p7 }
  0xce   : > { %p2563_p4 = pneg %p2562_p2 }
  0xd0   : > { %p2568_p8 = pnand %p2566_p6, %p2563_p4 }
  0xd2   : > { %2571 = shalt.err (!%p2568_p8)
}
  0xd3   : > { %s2572_s25 = scalar_lea.vmem %s367_s27, 512  ;;  %p2580_p12 = scmp.lt.s32.totalorder %s367_s27, %s367_s27 }
  0xd4   : > { %p2573_p9 = scmp.ne.s32.totalorder %s367_s27, %s2572_s25  ;;  %p2581_p13 = scmp.lt.s32.totalorder %s2572_s25, %s2572_s25 }
  0xd6   : > { %p2575_p10 = pnand %p2573_p9, %p2952_p7  ;;  %p2582_p1 = por %p2581_p13, %p2580_p12 }
  0xd8   : > { %p2576_p11 = pneg %p2575_p10 }
  0xda   : > { %p2583_p3 = pnand %p2582_p1, %p2576_p11 }
  0xdc   : > { %2586 = shalt.err (!%p2583_p3)
}
  0xdd   : > { %2239 = dma.hbm_to_vmem [thread:$0]  (!%p2936_p5), %s3774_s6, 512, %s367_s27, [#allocation16], %s3716_s19, %s3716_s19, %s3717_s20  }
  0xde   : > { %s3775_s7 = sld [smem:[#allocation56_spill]] }
  0xe4   : > { %s2587_s26 = scalar_lea.hbm %s3775_s7, 64 }
  0xe5   : > { %p2588_p0 = scmp.ne.s32.totalorder %s3775_s7, %s2587_s26  ;;  %p2594_p6 = scmp.lt.u32.totalorder %s2587_s26, %s3775_s7 }
  0xe7   : > { %p2590_p2 = pnand %p2588_p0, %p2952_p7 }
  0xe9   : > { %p2591_p4 = pneg %p2590_p2 }
  0xeb   : > { %p2596_p8 = pnand %p2594_p6, %p2591_p4 }
  0xed   : > { %2599 = shalt.err (!%p2596_p8)
}
  0xee   : > { %s2796_s14 = smov [#allocation18]   ;;  %s3776_s9 = sld [smem:[#allocation58_spill]] }
  0xef   : > { %2242 = dma.hbm_to_smem (!%p2936_p5), %s3775_s7, 64, %s2796_s14, [#allocation8]  }
  0xf4   : > { %s2600_s15 = scalar_lea.hbm %s3776_s9, 16 }
  0xf5   : > { %p2601_p9 = scmp.ne.s32.totalorder %s3776_s9, %s2600_s15  ;;  %p2607_p12 = scmp.lt.u32.totalorder %s2600_s15, %s3776_s9 }
  0xf7   : > { %p2603_p10 = pnand %p2601_p9, %p2952_p7 }
  0xf9   : > { %p2604_p11 = pneg %p2603_p10 }
  0xfb   : > { %p2609_p13 = pnand %p2607_p12, %p2604_p11 }
  0xfd   : > { %2612 = shalt.err (!%p2609_p13)
}
  0xfe   : > { %s2797_s24 = smov [#allocation21]   ;;  %s3777_s0 = sld [smem:[#allocation40_spill]] }
  0xff   : > { %s3778_s27 = sld [smem:[#allocation32_spill]]  ;;  %s1953_s25 = sadd.s32 4294967294, %s2785_s23  }
 0x100   : > { %2248 = dma.hbm_to_smem (!%p2936_p5), %s3776_s9, 16, %s2797_s24, [#allocation20]  }
 0x101   : > { %s3779_s11 = sld [smem:[#allocation31_spill]]  ;;  %s40_s29 = sadd.s32 1, %s2777_s21 }
 0x102   : > { %s43_s13 = sadd.s32 1, %s2781_s22  ;;  %p41_p7 = scmp.ge.s32.totalorder %s40_s29, 2 }
 0x103   : > { %s3780_s15 = sld [smem:[#allocation30_spill]]  ;;  %s50_s30 = sadd.s32 1, %s2765_s18 }
 0x104   : > { %p57_p1 = scmp.ne.s32.totalorder %s2765_s18, %s2761_s17  ;;  %p58_p3 = scmp.eq.s32.totalorder %s2785_s23, 0 }
 0x105   : > { %s3836_s29 = smov (%p41_p7, %s40_s29), 0  ;;  %s3838_s13 = smov (!%p41_p7, %s43_s13), %s2781_s22 }
 0x106   : > { %3781 = sst [smem:[#allocation42_spill]] %s3836_s29  ;;  %p3149_p0 = por %p58_p3, %p57_p1 }
 0x107   : > { %p63_p5 = scmp.ne.s32.totalorder %s2761_s17, %s2757_s16  ;;  %p45_p2 = scmp.ge.s32.totalorder %s3838_s13, 2 }
 0x108   : > { %s263_s26 = ssub.s32 %s2777_s21, %s3836_s29  ;;  %p3783_p4 = scmp.ne.s32.totalorder %s3777_s0, 0 }
 0x109   : > { %s267_s24 = sadd.s32 1, %s3778_s27  ;;  %s3840_s13 = smov (%p45_p2, %s3838_s13), 0 }
 0x10a   : > { %p3159_p6 = por %p3783_p4, %p63_p5  ;;  %3785 = sst [smem:[#allocation43_spill]] %s3840_s13 }
 0x10b   : > { %p277_p8 = scmp.ne.s32.totalorder %s3778_s27, %s3779_s11  ;;  %s3786_s28 = sadd.s32 4294967295, %s2785_s23  }
 0x10c   : > { %p278_p9 = scmp.eq.s32.totalorder %s3786_s28, 3  ;;  %s47_s14 = ssub.s32 %s2781_s22, %s3840_s13 }
 0x10d   : > { %p283_p10 = scmp.ne.s32.totalorder %s3779_s11, %s3780_s15  ;;  %p48_p11 = scmp.eq.s32.totalorder %s47_s14, 0 }
 0x10e   : > { %s264_s16 = sor.u32 %s263_s26, %s47_s14  ;;  %p3174_p13 = por %p278_p9, %p277_p8 }
 0x10f   : > { %p265_p12 = scmp.eq.s32.totalorder %s264_s16, 0  ;;  %p284_p7 = scmp.eq.s32.totalorder %s1953_s25, 3 }
 0x110   : > { %s3787_s0 = scalar_select %p3174_p13, 1, 0 }
 0x111   : > { %s3179_s19 = scalar_select %p48_p11, %s2765_s18, %s50_s30  }
 0x112   : > { %3788 = sst [smem:[#allocation44_spill]] %s3787_s0  ;;  %s3842_s27 = smov (!%p265_p12, %s3778_s27), %s267_s24 }
 0x113   : > { %3789 = sst [smem:[#allocation45_spill]] %s3179_s19  ;;  %p2266_p1 = scmp.lt.s32.totalorder %s2785_s23, 4 }
 0x114   : > { %3790 = sst [smem:[#allocation46_spill]] %s3842_s27  ;;  %s407_s20 = sand.u32 1, %s2765_s18  }
 0x115   : > { %s2051_s1 = sshll.u32 %s2781_s22, 7  ;;  %p3187_p3 = por %p284_p7, %p283_p10 }
 0x116   : > { %s1965_s11 = sshll.u32 %s407_s20, 3  ;;  %s3793_s14 = sld [smem:[#allocation49_spill]] }
 0x117   : > { %s3791_s28 = scalar_select %p3187_p3, 1, 0 }
 0x118   : > { %p3198_p5 = pnand %p2266_p1, %p3149_p0  ;;  %s411_s30 = scalar_lea.vmem [#allocation5], %s1965_s11 }
 0x119   : > { %3792 = sst [smem:[#allocation47_spill]] %s3791_s28  ;;  %s418_s24 = sshll.u32 %s411_s30, 4  ;;  %s3202_s24 = int_to_ptr.vmem [resolvable:$true] %s418_s24 }
 0x11a   : > { %s3204_s3 = scalar_lea.sflag [#allocation6], %s407_s20  ;;  %p2615_p4 = pneg %p3198_p5 }
 0x11c   : > { %s3794_s2 = smov %s3793_s14  ;;  %s3194_s16 = scalar_lea.hbm %s3793_s14, %s2051_s1 }
 0x11d   : > { %s2613_s15 = scalar_lea.hbm %s3194_s16, 128  ;;  %s2618_s26 = scalar_lea.hbm %s3794_s2, 256 }
 0x11e   : > { %p2614_p2 = scmp.ne.s32.totalorder %s3194_s16, %s2613_s15  ;;  %p2619_p0 = scmp.lt.u32.totalorder %s3194_s16, %s3794_s2 }
 0x11f   : > { %p2620_p10 = scmp.lt.u32.totalorder %s2618_s26, %s2613_s15  ;;  %p2622_p12 = scmp.lt.u32.totalorder %s2613_s15, %s3194_s16 }
 0x120   : > { %p2616_p8 = pnand %p2615_p4, %p2614_p2 }
 0x121   : > { %p2621_p11 = por %p2620_p10, %p2619_p0 }
 0x122   : > { %p2617_p9 = pneg %p2616_p8 }
 0x123   : > { %p2623_p7 = por %p2622_p12, %p2621_p11 }
 0x125   : > { %p2624_p1 = pnand %p2623_p7, %p2617_p9 }
 0x127   : > { %2627 = shalt.err (!%p2624_p1)
}
 0x128   : > { %s2628_s20 = scalar_lea.vmem %s3202_s24, 128  ;;  %s2798_s11 = smov [#allocation5]  }
 0x129   : > { %p2629_p2 = scmp.ne.s32.totalorder %s3202_s24, %s2628_s20  ;;  %s2633_s30 = sshll.u32 %s2798_s11, 4  ;;  %s2634_s30 = int_to_ptr.vmem [resolvable:$false] %s2633_s30 }
 0x12a   : > { %s2635_s4 = scalar_lea.vmem %s2634_s30, 256  ;;  %p2636_p13 = scmp.lt.s32.totalorder %s3202_s24, %s2634_s30 }
 0x12b   : > { %p2631_p8 = pnand %p2629_p2, %p2615_p4  ;;  %p2637_p0 = scmp.lt.s32.totalorder %s2635_s4, %s2628_s20 }
 0x12d   : > { %p2632_p3 = pneg %p2631_p8  ;;  %p2638_p10 = por %p2637_p0, %p2636_p13 }
 0x12f   : > { %p2639_p11 = pnand %p2638_p10, %p2632_p3 }
 0x131   : > { %2642 = shalt.err (!%p2639_p11)
}
 0x132   : > { %s3796_s15 = smov 4   ;;  %s3797_s1 = smov 64  }
 0x133   : > { %2252 = dma.hbm_to_vmem [thread:$0]  (!%p3198_p5), %s3194_s16, 128, %s3202_s24, %s3204_s3, %s3797_s1, %s3797_s1, %s3796_s15  }
 0x134   : > { %s3798_s12 = sld [smem:[#allocation41_spill]] }
 0x13a   : > { %p3799_p4 = scmp.ne.s32.totalorder %s3798_s12, 0 }
 0x13c   : > { %430 = sbr.rel (%p3799_p4) target bundleno = 2168 (0x878), region = 60 }
 0x143   : > { %s432_s26 = sand.u32 1, %s2761_s17  }
 0x144   : > { %s3238_s14 = sshll.u32 %s432_s26, 3  ;;  %s433_s20 = scalar_lea.sflag [#allocation6], %s432_s26 }
 0x145   : > { %s436_s11 = scalar_lea.vmem [#allocation5], %s3238_s14 }
 0x146   : > { %2716 = dma.done.wait (%p3159_p6), %s433_s20, 128  }
 0x147   : > { %2718 = vsyncadd (%p3159_p6), %s433_s20, 4294967168  ;;  %s3800_s25 = sld [smem:[#allocation40_spill]] }
 0x14d   : > { %p3801_p13 = scmp.ne.s32.totalorder %s3800_s25, 0 }
 0x14f   : > { %2720 = dma.done.wait (%p3801_p13), [#allocation10], 512  }
 0x150   : > { %2722 = vsyncadd (%p3801_p13), [#allocation10], 4294966784 }
 0x151   : > { %2724 = dma.done.wait (%p3801_p13), [#allocation13], 512  }
 0x152   : > { %2726 = vsyncadd (%p3801_p13), [#allocation13], 4294966784 }
 0x153   : > { %2728 = dma.done.wait (%p3801_p13), [#allocation16], 528  }
 0x154   : > { %2730 = vsyncadd (%p3801_p13), [#allocation16], 4294966768 }
 0x155   : > { %2732 = dma.done.wait (%p3801_p13), [#allocation8], 64  }
 0x156   : > { %2734 = vsyncadd (%p3801_p13), [#allocation8], 4294967232 }
 0x157   : > { %2736 = dma.done.wait (%p3801_p13), [#allocation20], 80  }
 0x158   : > { %2738 = vsyncadd (%p3801_p13), [#allocation20], 4294967216 }
 0x159   : > { %477 = sfence }
 0x15a   : > { %s3802_s3 = sld [smem:[#allocation31_spill]]  ;;  %s3804_s30 = sld [smem:[#allocation35_spill]] }
 0x160   : > { %s3719_s10 = sand.u32 1, %s3802_s3   ;;  %p1980_p6 = scmp.ne.s32.totalorder %s3804_s30, 0 }
 0x161   : > { %s3268_s16 = sshll.u32 %s3719_s10, 3  ;;  %v2383_v0 = vld [vmem:[#allocation12] sm:$0xff] (!%p1980_p6)   ;;  %v2799_v1 = vmov (!%p1980_p6), 0.0   ;;  %v2384_v2 = vld [vmem:[#allocation12 + $0x8] sm:$0xff] (!%p1980_p6)   ;;  %vm2800_vm0 = vmmov (!%p1980_p6), 0   ;;  %v2386_v3 = vld [vmem:[#allocation11] sm:$0xff] (!%p1980_p6)  }
 0x162   : > { %3803 = sst [smem:[#allocation48_spill]] %s3268_s16  ;;  %514 = sbr.rel (%p1980_p6) target bundleno = 592 (0x250), region = 104  ;;  %2093 = vmatprep.subr.bf16.mxu1 (!%p1980_p6), %v2799_v1  ;;  %2085 = vmatprep.subr.bf16.mxu0 (!%p1980_p6), %v2799_v1  ;;  %v2385_v4 = vld [vmem:[%s436_s11] sm:$0xff] (!%p1980_p6)   ;;  %vm538_vm1 = vcmask (!%p1980_p6), 261120   ;;  %vm653_vm2 = vcmask (!%p1980_p6), 253952  }
 0x163   : > { %2094 = vmatpush3.bf16.msra.mxu1 (!%p1980_p6), %v2383_v0  ;;  %2097 = vmatprep.mubr.msk.bf16.mxu1 (!%p1980_p6), %vm2800_vm0, %v2799_v1  ;;  %v2387_v5 = vld [vmem:[#allocation11 + $0x8] sm:$0xff] (!%p1980_p6)  }
 0x164   : > { %2095 = vmatprep.subr.bf16.mxu1 (!%p1980_p6), %v2799_v1  ;;  %2089 = vmatprep.mubr.msk.bf16.mxu0 (!%p1980_p6), %vm2800_vm0, %v2799_v1 }
 0x165   : > { %2086 = vmatpush3.bf16.msra.mxu0 (!%p1980_p6), %v2386_v3 }
 0x166   : > { %2087 = vmatprep.subr.bf16.mxu0 (!%p1980_p6), %v2799_v1 }
 0x167   : > { %2096 = vmatpush3.bf16.msra.mxu1 (!%p1980_p6), %v2384_v2 }
 0x169   : > { %2088 = vmatpush3.bf16.msra.mxu0 %v2387_v5 }
 0x16a   : > { %2098 = vmatmul.mubr.msk.bf16.vlgmr.msra.gmra.mrb[0].mxu1 %vm538_vm1, %v2385_v4 }
 0x16c   : > { %2090 = vmatmul.mubr.msk.bf16.vlgmr.msra.gmra.mrb[0].mxu0 %vm538_vm1, %v2385_v4 }
 0x23d   : > { %v635_v6 = vpop.f32.mrb[0].mxu1 }
 0x23e   : > { %v2099_v7 = vpop.f32.mrb[1].mxu1  ;;  %v644_v9 = vsel %vm538_vm1, %v635_v6, 0.0 }
 0x23f   : > { %v638_v8 = vpop.f32.mrb[2].mxu1  ;;  %v576_v13 = vpop.f32.mrb[0].mxu0 }
 0x240   : > { %v642_v10 = vpack.c.bf16 %v638_v8, %v635_v6  ;;  %v645_v11 = vsel %vm538_vm1, %v638_v8, 0.0  ;;  %v2100_v12 = vpop.f32.mrb[3].mxu1  ;;  %v2091_v15 = vpop.f32.mrb[1].mxu0 }
 0x241   : > { %v646_v14 = vadd.f32 %v645_v11, %v644_v9  ;;  %v579_v16 = vpop.f32.mrb[2].mxu0 }
 0x242   : > { %643 = vst.msk [vmem:[#allocation3] sm:$0xff] %vm538_vm1, %v642_v10  ;;  %v583_v18 = vpack.c.bf16 %v579_v16, %v576_v13  ;;  %v2092_v19 = vpop.f32.mrb[3].mxu0 }
 0x243   : > { %v647_v17 = vrot.slane %v646_v14, 4 }
 0x244   : > { %584 = vst.msk [vmem:[#allocation2] sm:$0xff] %vm538_vm1, %v583_v18 }
 0x245   : > { %v648_v20 = vadd.f32 %v647_v17, %v646_v14 }
 0x247   : > { %v649_v21 = vrot.slane %v648_v20, 2 }
 0x249   : > { %v650_v22 = vadd.f32 %v649_v21, %v648_v20 }
 0x24b   : > { %v651_v23 = vrot.slane %v650_v22, 1 }
 0x24d   : > { %v652_v24 = vadd.f32 %v651_v23, %v650_v22 }
 0x24f   : > { %654 = vst.msk [vmem:[#allocation4] sm:$0x1] %vm653_vm2, %v652_v24 }
 0x250 PF: > { %v2388_v25 = vld [vmem:[#allocation9] sm:$0xff]   ;;  %s3805_s4 = sld [smem:[#allocation35_spill]]  ;;  %v2801_v26 = vmov 0.0   ;;  %v2389_v27 = vld [vmem:[#allocation9 + $0x8] sm:$0xff]   ;;  %vm2802_vm3 = vmmov 0   ;;  %vm724_vm4 = vcmask 64512  }
 0x251   : > { %2101 = vmatprep.subr.bf16.mxu0 %v2801_v26  ;;  %2109 = vmatprep.subr.bf16.mxu1 %v2801_v26  ;;  %v722_v28 = vld [vmem:[#allocation2] sm:$0xff]  ;;  %s3724_s12 = smov 120   ;;  %vm677_vm5 = vcmask 261120   ;;  %s3722_s25 = smov 112   ;;  %vm943_vm6 = vcmask 130048   ;;  %vm1307_vm7 = vcmask 1043456  }
 0x252   : > { %2102 = vmatpush3.bf16.msra.mxu0 %v2388_v25  ;;  %2105 = vmatprep.mubr.msk.bf16.mxu0 %vm2802_vm3, %v2801_v26  ;;  %v729_v29 = vsel %vm724_vm4, %v722_v28, 0  ;;  %s3720_s14 = smov 104   ;;  %s2001_s3 = sld [smem:[#allocation18 + $0x80]] }
 0x253   : > { %2103 = vmatprep.subr.bf16.mxu0 %v2801_v26  ;;  %775 = vrot.lane.b32.xlu0 %v722_v28, %s3724_s12  ;;  %s2007_s30 = sld [smem:[#allocation18 + $0x100]]  ;;  %s2002_s10 = sld [smem:[#allocation18 + $0x81]] }
 0x254   : > { %2110 = vmatpush3.bf16.xpose.msra.mxu1 %v729_v29  ;;  %2111 = vmatprep.mubr.msk.bf16.mxu1 %vm2802_vm3, %v2801_v26  ;;  %s2008_s24 = sld [smem:[#allocation18 + $0x101]]  ;;  %s2015_s2 = sld [smem:[#allocation18 + $0x182]] }
 0x255   : > { %2121 = vmatprep.subr.bf16.mxu1 %v2801_v26  ;;  %s3374_s6 = sld [smem:[#allocation19 + $0x80]]  ;;  %s3380_s7 = sld [smem:[#allocation19 + $0x81]] }
 0x256   : > { %s1988_s15 = sshll.u32 %s3805_s4, 3  ;;  %2104 = vmatpush3.bf16.msra.mxu0 %v2389_v27  ;;  %s3394_s21 = sld [smem:[#allocation19 + $0x82]] }
 0x257   : > { %s3286_s1 = sshra.s32 %s1988_s15, 3  ;;  %825 = vrot.lane.b32.xlu0 %v722_v28, %s3722_s25  ;;  %2115 = vmatprep.subr.bf16.mxu0 %v2801_v26  ;;  %s2013_s15 = sld [smem:[#allocation18 + $0x180]] }
 0x258   : > { %s3726_s26 = sshll.u32 %s3286_s1, 2  ;;  %v957_v50 = vstv %s2001_s3  ;;  %s3357_s3 = sld [smem:[#allocation19]] }
 0x259   : > { %s659_s20 = scalar_lea.vmem %s436_s11, %s3726_s26 [#allocation5]  ;;  %s923_s11 = sld [smem:[#allocation18]]  ;;  %v990_v51 = vstv %s2007_s30  ;;  %v960_v54 = vstv %s2002_s10 }
 0x25a   : > { %v660_v30 = vld [vmem:[%s659_s20] sm:$0xf]  ;;  %s1997_s20 = sld [smem:[#allocation18 + $0x1]]  ;;  %s2009_s26 = sld [smem:[#allocation18 + $0x102]]  ;;  %v993_v55 = vstv %s2008_s24  ;;  %v1030_v60 = vstv %s2015_s2 }
 0x25b   : > { %2106 = vmatmul.mubr.msk.bf16.vlgmr.msra.gmra.mrb[0].mxu0 %vm677_vm5, %v660_v30  ;;  %s3327_s10 = sld [smem:[#allocation18 + $0x83]]  ;;  %s3359_s30 = sld [smem:[#allocation19 + $0x1]] }
 0x25c   : > { %2117 = vmatprep.mubr.msk.bf16.mxu0 %vm2802_vm3, %v2801_v26  ;;  %s2010_s2 = sld [smem:[#allocation18 + $0x103]]  ;;  %s1180_s13 = sshrl.u32 %s3374_s6, 16 }
 0x25d   : > { %v1023_v52 = vstv %s2013_s15  ;;  %s2016_s24 = sld [smem:[#allocation18 + $0x183]]  ;;  %s2027_s15 = sld [smem:[#allocation21 + $0x1]] }
 0x25e   : > { %p1057_p3 = scmp.ne.f32.partialorder %s3357_s3, %s3357_s3  ;;  %s1181_s22 = sand.u32 1, %s1180_s13 }
 0x25f   : > { %v924_v49 = vstv %s923_s11  ;;  %s3325_s11 = sld [smem:[#allocation18 + $0x3]]  ;;  %s3404_s13 = sld [smem:[#allocation19 + $0x101]] }
 0x260   : > { %v927_v53 = vstv %s1997_s20  ;;  %v997_v59 = vstv %s2009_s26  ;;  %s1058_s20 = sshrl.u32 %s3357_s3, 16  ;;  %p1179_p7 = scmp.ne.f32.partialorder %s3374_s6, %s3374_s6 }
 0x261   : > { %v968_v29 = vstv %s3327_s10  ;;  %s3362_s10 = sld [smem:[#allocation19 + $0x2]]  ;;  %p1073_p5 = scmp.ne.f32.partialorder %s3359_s30, %s3359_s30 }
 0x262   : > { %v1001_v30 = vstv %s2010_s2  ;;  %s1074_s2 = sshrl.u32 %s3359_s30, 16  ;;  %p1195_p1 = scmp.ne.f32.partialorder %s3380_s7, %s3380_s7 }
 0x263   : > { %p1212_p2 = scmp.ne.f32.partialorder %s3394_s21, %s3394_s21  ;;  %s3446_s16 = sld [smem:[#allocation19 + $0x103]] }
 0x265   : > { %p1415_p10 = scmp.ne.f32.partialorder %s3404_s13, %s3404_s13 }
 0x267   : > { %p1090_p9 = scmp.ne.f32.partialorder %s3362_s10, %s3362_s10 }
 0x269   : > { %p1449_p4 = scmp.ne.f32.partialorder %s3446_s16, %s3446_s16 }
 0x2c5   : > { %v776_v31 = vpop.permute.xlu0 %775 }
 0x2c6   : > { %v781_v32 = vsel %vm724_vm4, %v776_v31, 0  ;;  %v1034_v31 = vstv %s2016_s24 }
 0x2c7   : > { %2116 = vmatpush3.bf16.xpose.msra.mxu0 %v781_v32 }
 0x2c8   : > { %2127 = vmatprep.subr.bf16.mxu0 %v2801_v26 }
 0x2c9   : > { %v826_v33 = vpop.permute.xlu0 %825 }
 0x2ca   : > { %v831_v38 = vsel %vm724_vm4, %v826_v33, 0 }
 0x32e   : > { %v715_v34 = vpop.f32.mrb[0].mxu0 }
 0x32f   : > { %v721_v35 = vpack.c.bf16 %v715_v34, %v715_v34  ;;  %v2107_v36 = vpop.f32.mrb[1].mxu0 }
 0x330   : > { %v718_v37 = vpop.f32.mrb[2].mxu0 }
 0x331   : > { %823 = vrot.lane.b32.xlu0 %v721_v35, %s3722_s25  ;;  %772 = vrot.lane.b32.xlu1 %v721_v35, %s3724_s12  ;;  %v2108_v39 = vpop.f32.mrb[3].mxu0  ;;  %s1998_s25 = sld [smem:[#allocation18 + $0x2]] }
 0x332   : > { %2112 = vmatmul.mubr.msk.bf16.vlgmr.msra.gmra.mrb[0].mxu1 %vm724_vm4, %v721_v35  ;;  %s2003_s12 = sld [smem:[#allocation18 + $0x82]] }
 0x333   : > { %2122 = vmatpush3.bf16.xpose.msra.mxu1 %v831_v38  ;;  %2123 = vmatprep.mubr.msk.bf16.mxu1 %vm2802_vm3, %v2801_v26 }
 0x334   : > { %2133 = vmatprep.subr.bf16.mxu1 %v2801_v26 }
 0x335   : > { %875 = vrot.lane.b32.xlu1 %v722_v28, %s3720_s14  ;;  %v935_v28 = vstv %s3325_s11  ;;  %s1059_s11 = sand.u32 1, %s1058_s20 }
 0x336   : > { %s1060_s24 = sadd.s32 32767, %s1059_s11 }
 0x337   : > { %v931_v57 = vstv %s1998_s25  ;;  %s3808_s25 = smov 112   ;;  %s1061_s20 = sadd.s32 %s1060_s24, %s3357_s3 }
 0x338   : > { %v964_v58 = vstv %s2003_s12  ;;  %s3806_s12 = sshll.u32 %s3286_s1, 2  ;;  %s3807_s1 = smov 120  }
 0x339   : > { %873 = vrot.lane.b32.xlu1 %v721_v35, %s3720_s14  ;;  %s2014_s14 = sld [smem:[#allocation18 + $0x181]]  ;;  %s939_s26 = scalar_lea.vmem [#allocation17], %s3806_s12 }
 0x33a   : > { %v2006_v25 = vld [vmem:[%s939_s26] ss:$8 sps:$4 sm:$0xff]   ;;  %v2012_v27 = vld [vmem:[%s939_s26 + $0x10] ss:$8 sps:$4 sm:$0xff]   ;;  %s3369_s12 = sld [smem:[#allocation19 + $0x3]]  ;;  %s1075_s26 = sand.u32 1, %s1074_s2 }
 0x33b   : > { %v975_v33 = vunpack.c.h.bf16 %v2006_v25  ;;  %v941_v34 = vunpack.c.l.bf16 %v2006_v25  ;;  %v1008_v35 = vunpack.c.l.bf16 %v2012_v27  ;;  %v1041_v36 = vunpack.c.h.bf16 %v2012_v27  ;;  %s1076_s5 = sadd.s32 32767, %s1075_s26  ;;  %s1062_s11 = sand.u32 4294901760, %s1061_s20 }
 0x33c   : > { %s1077_s2 = sadd.s32 %s3359_s30, %s1076_s5  ;;  %s3844_s11 = smov (%p1057_p3, %s1062_s11), 2143289344 }
 0x33d   : > { %s1078_s26 = sand.u32 4294901760, %s1077_s2  ;;  %s3389_s3 = sld [smem:[#allocation19 + $0x100]] }
 0x33e   : > { %s3846_s26 = smov (%p1073_p5, %s1078_s26), 2143289344  ;;  %s1196_s5 = sshrl.u32 %s3380_s7, 16 }
 0x33f   : > { %v1026_v56 = vstv %s2014_s14  ;;  %s3809_s14 = smov 104   ;;  %s1197_s2 = sand.u32 1, %s1196_s5 }
 0x340   : > { %s1108_s24 = sshrl.u32 %s3369_s12, 16  ;;  %p1107_p12 = scmp.ne.f32.partialorder %s3369_s12, %s3369_s12 }
 0x341   : > { %s1109_s9 = sand.u32 1, %s1108_s24  ;;  %s3402_s24 = sld [smem:[#allocation19 + $0x83]] }
 0x342   : > { %s1110_s29 = sadd.s32 32767, %s1109_s9 }
 0x343   : > { %p1399_p0 = scmp.ne.f32.partialorder %s3389_s3, %s3389_s3 }
 0x347   : > { %p1229_p8 = scmp.ne.f32.partialorder %s3402_s24, %s3402_s24 }
 0x3a3   : > { %v824_v40 = vpop.permute.xlu0 %823  ;;  %v773_v41 = vpop.permute.xlu1 %772 }
 0x3a4   : > { %2118 = vmatmul.mubr.msk.bf16.vlgmr.msra.gmra.mrb[4].mxu0 %vm724_vm4, %v773_v41  ;;  %2124 = vmatmul.mubr.msk.bf16.vlgmr.msra.gmra.mrb[4].mxu1 %vm724_vm4, %v824_v40 }
 0x3a5   : > { %2129 = vmatprep.mubr.msk.bf16.mxu0 %vm2802_vm3, %v2801_v26  ;;  %2135 = vmatprep.mubr.msk.bf16.mxu1 %vm2802_vm3, %v2801_v26 }
 0x3a7   : > { %v876_v42 = vpop.permute.xlu1 %875 }
 0x3a8   : > { %v881_v43 = vsel %vm724_vm4, %v876_v42, 0 }
 0x3a9   : > { %2128 = vmatpush3.bf16.xpose.msra.mxu0 %v881_v43 }
 0x3aa   : > { %2139 = vmatprep.subr.bf16.mxu0 %v2801_v26 }
 0x3ab   : > { %v874_v44 = vpop.permute.xlu1 %873 }
 0x3b0   : > { %2130 = vmatmul.mubr.msk.bf16.vlgmr.msra.gmra.mrb[8].mxu0 %vm724_vm4, %v874_v44 }
 0x3b1   : > { %2141 = vmatprep.mubr.msk.bf16.mxu0 %vm2802_vm3, %v2801_v26 }
 0x405   : > { %v765_v45 = vpop.f32.mrb[0].mxu1 }
 0x406   : > { %v2113_v46 = vpop.f32.mrb[1].mxu1  ;;  %v925_v61 = vmul.f32 %v924_v49, %v765_v45  ;;  %v958_v62 = vmul.f32 %v957_v50, %v765_v45  ;;  %v991_v63 = vmul.f32 %v990_v51, %v765_v45  ;;  %v1024_v0 = vmul.f32 %v1023_v52, %v765_v45 }
 0x407   : > { %v768_v47 = vpop.f32.mrb[2].mxu1 }
 0x408   : > { %v2114_v48 = vpop.f32.mrb[3].mxu1 }
 0x477   : > { %v817_v1 = vpop.f32.mrb[4].mxu0  ;;  %v867_v2 = vpop.f32.mrb[4].mxu1 }
 0x478   : > { %v928_v3 = vmul.f32 %v927_v53, %v817_v1  ;;  %v961_v4 = vmul.f32 %v960_v54, %v817_v1  ;;  %v994_v5 = vmul.f32 %v993_v55, %v817_v1  ;;  %v1027_v6 = vmul.f32 %v1026_v56, %v817_v1  ;;  %v2119_v7 = vpop.f32.mrb[5].mxu0  ;;  %v2125_v8 = vpop.f32.mrb[5].mxu1  ;;  %v723_v56 = vld [vmem:[#allocation3] sm:$0xff] }
 0x479   : > { %v932_v9 = vmul.f32 %v931_v57, %v867_v2  ;;  %v965_v10 = vmul.f32 %v964_v58, %v867_v2  ;;  %v998_v11 = vmul.f32 %v997_v59, %v867_v2  ;;  %v1031_v12 = vmul.f32 %v1030_v60, %v867_v2  ;;  %v820_v13 = vpop.f32.mrb[6].mxu0  ;;  %v870_v14 = vpop.f32.mrb[6].mxu1  ;;  %2134 = vmatpush3.bf16.msra.mxu1 %v723_v56 }
 0x47a   : > { %v929_v15 = vadd.f32 %v928_v3, %v925_v61  ;;  %v962_v16 = vadd.f32 %v961_v4, %v958_v62  ;;  %v995_v17 = vadd.f32 %v994_v5, %v991_v63  ;;  %v1028_v18 = vadd.f32 %v1027_v6, %v1024_v0  ;;  %v2120_v19 = vpop.f32.mrb[7].mxu0  ;;  %v2126_v20 = vpop.f32.mrb[7].mxu1  ;;  %2145 = vmatprep.subr.bf16.mxu1 %v2801_v26 }
 0x47b   : > { %v1127_v13 = vlaneseq }
 0x47c   : > { %v966_v21 = vadd.f32 %v965_v10, %v962_v16  ;;  %v933_v22 = vadd.f32 %v932_v9, %v929_v15  ;;  %v999_v23 = vadd.f32 %v998_v11, %v995_v17  ;;  %v1032_v24 = vadd.f32 %v1031_v12, %v1028_v18  ;;  %v3364_v15 = vld [vmem:[#allocation4] sm:$0x1] }
 0x47d   : > { %v1128_v14 = vshrl.u32 %v1127_v13, 7  ;;  %v1245_v17 = vstv %s2027_s15  ;;  %s1091_s15 = sshrl.u32 %s3362_s10, 16 }
 0x47e   : > { %v1246_v18 = vmul.f32 %v1245_v17, %v3364_v15  ;;  %s1092_s8 = sand.u32 1, %s1091_s15  ;;  %s1182_s15 = sadd.s32 32767, %s1181_s22 }
 0x47f   : > { %v3367_v16 = vsub.s32 0, %v1128_v14 }
 0x481   : > { %v1251_v19 = vrot.slane %v1246_v18, %v3367_v16 }
 0x483   : > { %v917_v32 = vpop.f32.mrb[8].mxu0 }
 0x484   : > { %v936_v37 = vmul.f32 %v935_v28, %v917_v32  ;;  %v969_v38 = vmul.f32 %v968_v29, %v917_v32  ;;  %v1002_v39 = vmul.f32 %v1001_v30, %v917_v32  ;;  %v1035_v40 = vmul.f32 %v1034_v31, %v917_v32  ;;  %v2131_v41 = vpop.f32.mrb[9].mxu0 }
 0x485   : > { %v920_v42 = vpop.f32.mrb[10].mxu0 }
 0x486   : > { %v2132_v43 = vpop.f32.mrb[11].mxu0  ;;  %v970_v44 = vadd.f32 %v969_v38, %v966_v21  ;;  %v937_v45 = vadd.f32 %v936_v37, %v933_v22  ;;  %v1003_v46 = vadd.f32 %v1002_v39, %v999_v23  ;;  %v1036_v47 = vadd.f32 %v1035_v40, %v1032_v24 }
 0x488   : > { %v976_v48 = vadd.f32 %v975_v33, %v970_v44  ;;  %v942_v49 = vadd.f32 %v941_v34, %v937_v45  ;;  %v1009_v50 = vadd.f32 %v1008_v35, %v1003_v46  ;;  %v1042_v51 = vadd.f32 %v1041_v36, %v1036_v47 }
 0x48a   : > { %v977_v52 = vsel %vm943_vm6, %v976_v48, -inf  ;;  %v944_v53 = vsel %vm943_vm6, %v942_v49, -inf  ;;  %v1010_v54 = vsel %vm943_vm6, %v1009_v50, -inf  ;;  %v1043_v55 = vsel %vm943_vm6, %v1042_v51, -inf }
 0x48b   : > { %978 = vmax.xlane.f32.xlu1 %v977_v52  ;;  %945 = vmax.xlane.f32.xlu0 %v944_v53 }
 0x48f   : > { %1011 = vmax.xlane.f32.xlu0 %v1010_v54 }
 0x493   : > { %1044 = vmax.xlane.f32.xlu0 %v1043_v55 }
 0x518   : > { %v979_v57 = vpop.xlane.xlu1 %978  ;;  %v946_v58 = vpop.xlane.xlu0 %945 }
 0x519   : > { %v980_v59 = vsub.f32 %v976_v48, %v979_v57  ;;  %v947_v60 = vsub.f32 %v942_v49, %v946_v58 }
 0x51b   : > { %v981_v61 = vmul.f32 1.442695, %v980_v59  ;;  %v948_v62 = vmul.f32 1.442695, %v947_v60 }
 0x51c   : > { %v1012_v63 = vpop.xlane.xlu0 %1011 }
 0x51d   : > { %2390 = vpow2.f32 %v981_v61  ;;  %v1013_v0 = vsub.f32 %v1009_v50, %v1012_v63 }
 0x51e   : > { %2392 = vpow2.f32 %v948_v62 }
 0x51f   : > { %v1014_v1 = vmul.f32 1.442695, %v1013_v0 }
 0x520   : > { %v1045_v2 = vpop.xlane.xlu0 %1044 }
 0x521   : > { %2394 = vpow2.f32 %v1014_v1  ;;  %v1046_v3 = vsub.f32 %v1042_v51, %v1045_v2 }
 0x523   : > { %v1047_v4 = vmul.f32 1.442695, %v1046_v3 }
 0x525   : > { %2396 = vpow2.f32 %v1047_v4 }
 0x527   : > { %v3338_v5 = vpop.eup %2390 }
 0x528   : > { %v3340_v6 = vpop.eup %2392  ;;  %v983_v7 = vsel %vm943_vm6, %v3338_v5, 0.0 }
 0x529   : > { %984 = vadd.xlane.f32.xlu0 %v983_v7  ;;  %v950_v8 = vsel %vm943_vm6, %v3340_v6, 0.0 }
 0x52a   : > { %951 = vadd.xlane.f32.xlu1 %v950_v8 }
 0x52b   : > { %v3346_v9 = vpop.eup %2394 }
 0x52c   : > { %v1016_v10 = vsel %vm943_vm6, %v3346_v9, 0.0 }
 0x52e   : > { %1017 = vadd.xlane.f32.xlu1 %v1016_v10 }
 0x52f   : > { %v3350_v11 = vpop.eup %2396 }
 0x530   : > { %v1049_v12 = vsel %vm943_vm6, %v3350_v11, 0.0 }
 0x531   : > { %1050 = vadd.xlane.f32.xlu0 %v1049_v12 }
 0x53f   : > { %1253 = vrot.lane.b32.xlu1 %v723_v56, %s3807_s1 }
 0x543   : > { %1472 = vrot.lane.b32.xlu1 %v723_v56, %s3808_s25 }
 0x547   : > { %1645 = vrot.lane.b32.xlu1 %v723_v56, %s3809_s14  ;;  %1256 = vrot.lane.b32.xlu0 %v1251_v19, %s3807_s1  ;;  %s1093_s1 = sadd.s32 32767, %s1092_s8  ;;  %s1111_s8 = sadd.s32 %s3369_s12, %s1110_s29 }
 0x548   : > { %s1094_s20 = sadd.s32 %s3362_s10, %s1093_s1  ;;  %s1112_s9 = sand.u32 4294901760, %s1111_s8 }
 0x549   : > { %s1095_s30 = sand.u32 4294901760, %s1094_s20  ;;  %s1183_s1 = sadd.s32 %s3374_s6, %s1182_s15 }
 0x54a   : > { %s3848_s30 = smov (%p1090_p9, %s1095_s30), 2143289344  ;;  %s1198_s10 = sadd.s32 32767, %s1197_s2 }
 0x54b   : > { %s3850_s9 = smov (%p1107_p12, %s1112_s9), 2143289344  ;;  %s1213_s29 = sshrl.u32 %s3394_s21, 16 }
 0x54c   : > { %s3412_s20 = sld [smem:[#allocation19 + $0x180]]  ;;  %s1199_s22 = sadd.s32 %s3380_s7, %s1198_s10 }
 0x54d   : > { %s1184_s12 = sand.u32 4294901760, %s1183_s1  ;;  %s1214_s5 = sand.u32 1, %s1213_s29 }
 0x54e   : > { %s1230_s8 = sshrl.u32 %s3402_s24, 16  ;;  %s1200_s15 = sand.u32 4294901760, %s1199_s22 }
 0x54f   : > { %s3420_s2 = sld [smem:[#allocation19 + $0x181]]  ;;  %s3852_s12 = smov (%p1179_p7, %s1184_s12), 2143289344 }
 0x550   : > { %s1215_s19 = sadd.s32 32767, %s1214_s5  ;;  %s1231_s18 = sand.u32 1, %s1230_s8 }
 0x551   : > { %s3854_s15 = smov (%p1195_p1, %s1200_s15), 2143289344  ;;  %s1065_s6 = sshrl.u32 %s3844_s11, 16 }
 0x552   : > { %s1400_s1 = sshrl.u32 %s3389_s3, 16  ;;  %s1232_s7 = sadd.s32 32767, %s1231_s18 }
 0x553   : > { %s3428_s10 = sld [smem:[#allocation19 + $0x102]]  ;;  %s1216_s29 = sadd.s32 %s3394_s21, %s1215_s19 }
 0x554   : > { %s3431_s22 = sld [smem:[#allocation19 + $0x182]]  ;;  %s1066_s17 = sshll.u32 %s1065_s6, 16 }
 0x555   : > { %s1401_s27 = sand.u32 1, %s1400_s1  ;;  %s1233_s5 = sadd.s32 %s3402_s24, %s1232_s7 }
 0x556   : > { %s1217_s8 = sand.u32 4294901760, %s1216_s29  ;;  %s1402_s28 = sadd.s32 32767, %s1401_s27 }
 0x557   : > { %s1416_s11 = sshrl.u32 %s3404_s13, 16  ;;  %s1081_s18 = sshrl.u32 %s3846_s26, 16 }
 0x558   : > { %s1234_s23 = sand.u32 4294901760, %s1233_s5  ;;  %s3856_s8 = smov (%p1212_p2, %s1217_s8), 2143289344 }
 0x559   : > { %s1403_s19 = sadd.s32 %s3389_s3, %s1402_s28  ;;  %s1417_s0 = sand.u32 1, %s1416_s11 }
 0x55a   : > { %s3858_s23 = smov (%p1229_p8, %s1234_s23), 2143289344  ;;  %s1433_s1 = sshrl.u32 %s3428_s10, 16 }
 0x55b   : > { %s1418_s21 = sadd.s32 32767, %s1417_s0  ;;  %s3450_s27 = sor.u32 %s1066_s17, %s1065_s6 }
 0x55c   : > { %s1404_s26 = sand.u32 4294901760, %s1403_s19  ;;  %s1082_s24 = sshll.u32 %s1081_s18, 16  ;;  %v1068_v29 = vstv %s3450_s27 }
 0x55d   : > { %s1434_s7 = sand.u32 1, %s1433_s1  ;;  %s1098_s29 = sshrl.u32 %s3848_s30, 16 }
 0x55e   : > { %s1419_s28 = sadd.s32 %s3404_s13, %s1418_s21  ;;  %s3860_s26 = smov (%p1399_p0, %s1404_s26), 2143289344 }
 0x55f   : > { %s1435_s5 = sadd.s32 32767, %s1434_s7  ;;  %s3458_s11 = sor.u32 %s1082_s24, %s1081_s18 }
 0x560   : > { %s1420_s3 = sand.u32 4294901760, %s1419_s28  ;;  %s1099_s4 = sshll.u32 %s1098_s29, 16  ;;  %v1084_v30 = vstv %s3458_s11 }
 0x561   : > { %s1450_s0 = sshrl.u32 %s3446_s16, 16  ;;  %s1115_s17 = sshrl.u32 %s3850_s9, 16 }
 0x562   : > { %s1436_s6 = sadd.s32 %s3428_s10, %s1435_s5  ;;  %s3862_s3 = smov (%p1415_p10, %s1420_s3), 2143289344 }
 0x563   : > { %p1432_p11 = scmp.ne.f32.partialorder %s3428_s10, %s3428_s10  ;;  %s1451_s30 = sand.u32 1, %s1450_s0 }
 0x564   : > { %s3467_s19 = sor.u32 %s1099_s4, %s1098_s29  ;;  %s1437_s1 = sand.u32 4294901760, %s1436_s6 }
 0x565   : > { %s1116_s13 = sshll.u32 %s1115_s17, 16  ;;  %s1573_s18 = sshrl.u32 %s3412_s20, 16  ;;  %v1101_v36 = vstv %s3467_s19 }
 0x566   : > { %s1187_s21 = sshrl.u32 %s3852_s12, 16  ;;  %s1452_s24 = sadd.s32 32767, %s1451_s30 }
 0x567   : > { %s3864_s1 = smov (%p1432_p11, %s1437_s1), 2143289344  ;;  %s3473_s9 = sor.u32 %s1116_s13, %s1115_s17 }
 0x568   : > { %s1574_s7 = sand.u32 1, %s1573_s18  ;;  %s1188_s28 = sshll.u32 %s1187_s21, 16  ;;  %v1118_v40 = vstv %s3473_s9 }
 0x569   : > { %s1453_s5 = sadd.s32 %s3446_s16, %s1452_s24  ;;  %s1589_s4 = sshrl.u32 %s3420_s2, 16 }
 0x56a   : > { %s1575_s10 = sadd.s32 32767, %s1574_s7  ;;  %s3479_s29 = sld [smem:[#allocation19 + $0x183]] }
 0x56b   : > { %s3481_s12 = sor.u32 %s1188_s28, %s1187_s21  ;;  %s1454_s0 = sand.u32 4294901760, %s1453_s5 }
 0x56c   : > { %s1203_s6 = sshrl.u32 %s3854_s15, 16  ;;  %s1590_s30 = sand.u32 1, %s1589_s4  ;;  %v1190_v37 = vstv %s3481_s12 }
 0x56d   : > { %s1220_s17 = sshrl.u32 %s3856_s8, 16  ;;  %s1576_s13 = sadd.s32 %s3412_s20, %s1575_s10 }
 0x56e   : > { %s3866_s0 = smov (%p1449_p4, %s1454_s0), 2143289344  ;;  %p1572_p13 = scmp.ne.f32.partialorder %s3412_s20, %s3412_s20 }
 0x56f   : > { %s1591_s16 = sadd.s32 32767, %s1590_s30  ;;  %s1204_s18 = sshll.u32 %s1203_s6, 16 }
 0x570   : > { %s1577_s24 = sand.u32 4294901760, %s1576_s13  ;;  %s1221_s7 = sshll.u32 %s1220_s17, 16 }
 0x571   : > { %s1606_s14 = sshrl.u32 %s3431_s22, 16  ;;  %s1592_s21 = sadd.s32 %s3420_s2, %s1591_s16 }
 0x572   : > { %s1623_s28 = sshrl.u32 %s3479_s29, 16  ;;  %s3868_s24 = smov (%p1572_p13, %s1577_s24), 2143289344 }
 0x573   : > { %s3495_s15 = sor.u32 %s1204_s18, %s1203_s6  ;;  %s1607_s8 = sand.u32 1, %s1606_s14 }
 0x574   : > { %p1588_p6 = scmp.ne.f32.partialorder %s3420_s2, %s3420_s2  ;;  %s1624_s20 = sand.u32 1, %s1623_s28  ;;  %v1206_v32 = vstv %s3495_s15 }
 0x575   : > { %s3499_s5 = sor.u32 %s1221_s7, %s1220_s17  ;;  %s1593_s4 = sand.u32 4294901760, %s1592_s21 }
 0x576   : > { %s1237_s10 = sshrl.u32 %s3858_s23, 16  ;;  %s1608_s30 = sadd.s32 32767, %s1607_s8  ;;  %v1223_v41 = vstv %s3499_s5 }
 0x577   : > { %s1407_s13 = sshrl.u32 %s3860_s26, 16  ;;  %s1625_s16 = sadd.s32 32767, %s1624_s20 }
 0x578   : > { %s3870_s4 = smov (%p1588_p6, %s1593_s4), 2143289344  ;;  %s3507_s6 = sshll.u32 %s1237_s10, 16 }
 0x579   : > { %s1609_s14 = sadd.s32 %s3431_s22, %s1608_s30  ;;  %s1423_s2 = sshrl.u32 %s3862_s3, 16 }
 0x57a   : > { %s1626_s18 = sadd.s32 %s3479_s29, %s1625_s16  ;;  %s1408_s17 = sshll.u32 %s1407_s13, 16 }
 0x57b   : > { %p1605_p3 = scmp.ne.f32.partialorder %s3431_s22, %s3431_s22  ;;  %s1610_s7 = sand.u32 4294901760, %s1609_s14 }
 0x57c   : > { %p1622_p5 = scmp.ne.f32.partialorder %s3479_s29, %s3479_s29  ;;  %s1424_s21 = sshll.u32 %s1423_s2, 16 }
 0x57d   : > { %s1627_s28 = sand.u32 4294901760, %s1626_s18  ;;  %s1580_s8 = sshrl.u32 %s3868_s24, 16 }
 0x57e   : > { %s1596_s20 = sshrl.u32 %s3870_s4, 16  ;;  %s3872_s7 = smov (%p1605_p3, %s1610_s7), 2143289344 }
 0x57f   : > { %s3874_s28 = smov (%p1622_p5, %s1627_s28), 2143289344  ;;  %s3524_s22 = sor.u32 %s1424_s21, %s1423_s2 }
 0x580   : > { %s1597_s3 = sshll.u32 %s1596_s20, 16  ;;  %s1440_s29 = sshrl.u32 %s3864_s1, 16  ;;  %v1426_v33 = vstv %s3524_s22 }
 0x581   : > { %s1457_s30 = sshrl.u32 %s3866_s0, 16  ;;  %s1581_s24 = sshll.u32 %s1580_s8, 16 }
 0x582   : > { %s1613_s4 = sshrl.u32 %s3872_s7, 16  ;;  %s3529_s16 = sor.u32 %s1597_s3, %s1596_s20 }
 0x583   : > { %s1630_s14 = sshrl.u32 %s3874_s28, 16  ;;  %s3535_s2 = sor.u32 %s1408_s17, %s1407_s13  ;;  %v1599_v34 = vstv %s3529_s16 }
 0x584   : > { %s1441_s18 = sshll.u32 %s1440_s29, 16  ;;  %s3542_s21 = sor.u32 %s1581_s24, %s1580_s8  ;;  %v1410_v38 = vstv %s3535_s2 }
 0x585   : > { %s1614_s26 = sshll.u32 %s1613_s4, 16  ;;  %s1458_s13 = sshll.u32 %s1457_s30, 16  ;;  %v1583_v42 = vstv %s3542_s21 }
 0x586   : > { %s1631_s17 = sshll.u32 %s1630_s14, 16  ;;  %s3559_s27 = sor.u32 %s3507_s6, %s1237_s10 }
 0x587   : > { %s1442_s11 = sor.u32 %s1441_s18, %s1440_s29  ;;  %s1615_s15 = sor.u32 %s1614_s26, %s1613_s4  ;;  %v1240_v52 = vstv %s3559_s27 }
 0x588   : > { %s3571_s19 = sor.u32 %s1458_s13, %s1457_s30  ;;  %s3575_s23 = sor.u32 %s1631_s17, %s1630_s14  ;;  %v1443_v53 = vstv %s1442_s11  ;;  %v1616_v55 = vstv %s1615_s15 }
 0x589   : > { %v1460_v59 = vstv %s3571_s19  ;;  %v1633_v60 = vstv %s3575_s23  ;;  %s2035_s1 = sld [smem:[#allocation21 + $0x2]]  ;;  %s2042_s9 = sld [smem:[#allocation21 + $0x3]] }
 0x58a   : > { %s3810_s12 = smov 104   ;;  %s1122_s0 = sld [smem:[#allocation21]] }
 0x58b   : > { %s3812_s5 = sld [smem:[#allocation35_spill]]  ;;  %s3813_s10 = sld [smem:[#allocation48_spill]] }
 0x58c   : > { %s3814_s6 = sld [smem:[#allocation31_spill]]  ;;  %s3817_s24 = sld [smem:[#allocation59_spill]] }
 0x58d   : > { %s3815_s8 = sld [smem:[#allocation44_spill]]  ;;  %s2806_s21 = smov [#allocation22]  }
 0x58e   : > { %s2647_s26 = sshll.u32 %s2806_s21, 4  ;;  %s2648_s26 = int_to_ptr.vmem [resolvable:$false] %s2647_s26 }
 0x58f   : > { %s2649_s13 = scalar_lea.vmem %s2648_s26, 256 }
 0x591   : > { %s3816_s22 = scalar_lea.vmem [#allocation22], %s3813_s10 }
 0x592   : > { %s1768_s3 = sshll.u32 %s3816_s22, 4  ;;  %s3818_s16 = smov %s3816_s22  ;;  %s3627_s3 = int_to_ptr.vmem [resolvable:$true] %s1768_s3 }
 0x593   : > { %s3819_s14 = sand.u32 1, %s3814_s6   ;;  %s2643_s18 = scalar_lea.vmem %s3627_s3, 128 }
 0x594   : > { %s1753_s2 = scalar_lea.sflag [#allocation7], %s3819_s14  ;;  %p2644_p9 = scmp.ne.s32.totalorder %s3627_s3, %s2643_s18 }
 0x595   : > { %p3820_p12 = scmp.ne.s32.totalorder %s3815_s8, 0  ;;  %p2650_p2 = scmp.lt.s32.totalorder %s3627_s3, %s2648_s26 }
 0x596   : > { %p2651_p8 = scmp.lt.s32.totalorder %s2649_s13, %s2643_s18 }
 0x597   : > { %p2645_p7 = pnand %p2644_p9, %p3820_p12 }
 0x598   : > { %p2652_p0 = por %p2651_p8, %p2650_p2 }
 0x599   : > { %p2646_p1 = pneg %p2645_p7 }
 0x59b   : > { %p2653_p10 = pnand %p2652_p0, %p2646_p1 }
 0x5b6   : > { %v985_v20 = vpop.xlane.xlu0 %984 }
 0x5b7   : > { %v952_v21 = vpop.xlane.xlu1 %951  ;;  %2398 = vrcp.f32 %v985_v20 }
 0x5b8   : > { %2400 = vrcp.f32 %v952_v21 }
 0x5bb   : > { %v1018_v22 = vpop.xlane.xlu1 %1017 }
 0x5bc   : > { %2402 = vrcp.f32 %v1018_v22  ;;  %v1176_v22 = vld [vmem:[#allocation14] sm:$0xf] }
 0x5be   : > { %v1051_v23 = vpop.xlane.xlu0 %1050 }
 0x5bf   : > { %2404 = vrcp.f32 %v1051_v23  ;;  %v1254_v24 = vpop.permute.xlu1 %1253  ;;  %v1355_v23 = vsel %vm1307_vm7, %v1176_v22, 0 }
 0x5c0   : > { %2140 = vmatpush3.bf16.msra.mxu0 %v1254_v24  ;;  %v1465_v24 = vstv %s2035_s1 }
 0x5c1   : > { %v2399_v25 = vpop.eup %2398  ;;  %2151 = vmatprep.subr.bf16.mxu0 %v2801_v26 }
 0x5c2   : > { %v2401_v27 = vpop.eup %2400  ;;  %v987_v28 = vmul.f32 %v2399_v25, %v3338_v5  ;;  %v1638_v25 = vstv %s2042_s9 }
 0x5c3   : > { %v954_v31 = vmul.f32 %v2401_v27, %v3340_v6  ;;  %v1303_v6 = vld [vmem:[#allocation14 + $0x4] sm:$0xf]  ;;  %v1466_v27 = vmul.f32 %v1465_v24, %v3364_v15 }
 0x5c4   : > { %v988_v35 = vpack.c.bf16 %v987_v28, %v987_v28  ;;  %v1639_v28 = vmul.f32 %v1638_v25, %v3364_v15 }
 0x5c5   : > { %v955_v39 = vpack.c.bf16 %v954_v31, %v954_v31  ;;  %v1124_v31 = vstv %s1122_s0 }
 0x5c6   : > { %v2403_v43 = vpop.eup %2402  ;;  %v1086_v44 = vmul.bf16 %v1084_v30, %v988_v35  ;;  %v1208_v45 = vmul.bf16 %v1206_v32, %v988_v35  ;;  %v1428_v46 = vmul.bf16 %v1426_v33, %v988_v35  ;;  %v1601_v47 = vmul.bf16 %v1599_v34, %v988_v35  ;;  %v1257_v34 = vpop.permute.xlu0 %1256 }
 0x5c7   : > { %v1020_v48 = vmul.f32 %v2403_v43, %v3346_v9  ;;  %v1070_v49 = vmul.bf16 %v1068_v29, %v955_v39  ;;  %v1192_v50 = vmul.bf16 %v1190_v37, %v955_v39  ;;  %v1412_v51 = vmul.bf16 %v1410_v38, %v955_v39  ;;  %v1473_v35 = vpop.permute.xlu1 %1472 }
 0x5c8   : > { %v1585_v54 = vmul.bf16 %v1583_v42, %v955_v39  ;;  %v1471_v29 = vrot.slane %v1466_v27, %v3367_v16  ;;  %v1644_v30 = vrot.slane %v1639_v28, %v3367_v16  ;;  %v1125_v32 = vmul.f32 %v1124_v31, %v3364_v15 }
 0x5c9   : > { %v2405_v56 = vpop.eup %2404  ;;  %v1021_v57 = vpack.c.bf16 %v1020_v48, %v1020_v48  ;;  %v1429_v58 = vadd.bf16 %v1428_v46, %v1412_v51  ;;  %v1087_v62 = vadd.bf16 %v1086_v44, %v1070_v49  ;;  %v1209_v63 = vadd.bf16 %v1208_v45, %v1192_v50 }
 0x5ca   : > { %v1053_v61 = vmul.f32 %v2405_v56, %v3350_v11  ;;  %v1602_v0 = vadd.bf16 %v1601_v47, %v1585_v54  ;;  %v1309_v11 = vsel %vm1307_vm7, %v1303_v6, 0  ;;  %1475 = vrot.lane.b32.xlu0 %v1471_v29, %s3808_s25  ;;  %1648 = vrot.lane.b32.xlu1 %v1644_v30, %s3810_s12  ;;  %v1130_v33 = vrot.slane %v1125_v32, %v3367_v16  ;;  %v1522_v16 = vld [vmem:[#allocation14 + $0x8] sm:$0xf]  ;;  %s3811_s25 = sld [smem:[#allocation36_spill]] }
 0x5cb   : > { %v1103_v1 = vmul.bf16 %v1101_v36, %v1021_v57  ;;  %v1225_v2 = vmul.bf16 %v1223_v41, %v1021_v57  ;;  %v1445_v3 = vmul.bf16 %v1443_v53, %v1021_v57  ;;  %v1618_v4 = vmul.bf16 %v1616_v55, %v1021_v57  ;;  %v1646_v15 = vpop.permute.xlu1 %1645 }
 0x5cc   : > { %v1054_v5 = vpack.c.bf16 %v1053_v61, %v1053_v61  ;;  %v1527_v48 = vsel %vm1307_vm7, %v1522_v16, 0 }
 0x5cd   : > { %v1104_v7 = vadd.bf16 %v1103_v1, %v1087_v62  ;;  %v1226_v8 = vadd.bf16 %v1225_v2, %v1209_v63  ;;  %v1446_v9 = vadd.bf16 %v1445_v3, %v1429_v58  ;;  %v1619_v10 = vadd.bf16 %v1618_v4, %v1602_v0 }
 0x5ce   : > { %v1120_v12 = vmul.bf16 %v1118_v40, %v1054_v5  ;;  %v1242_v13 = vmul.bf16 %v1240_v52, %v1054_v5  ;;  %v1462_v14 = vmul.bf16 %v1460_v59, %v1054_v5  ;;  %v1635_v17 = vmul.bf16 %v1633_v60, %v1054_v5  ;;  %v1695_v60 = vld [vmem:[#allocation14 + $0xc] sm:$0xf] }
 0x5cf   : > { %v1700_v2 = vsel %vm1307_vm7, %v1695_v60, 0 }
 0x5d0   : > { %v1121_v18 = vadd.bf16 %v1120_v12, %v1104_v7  ;;  %v1243_v19 = vadd.bf16 %v1242_v13, %v1226_v8  ;;  %v1463_v20 = vadd.bf16 %v1462_v14, %v1446_v9  ;;  %v1636_v21 = vadd.bf16 %v1635_v17, %v1619_v10  ;;  %s2047_s7 = sshll.u32 %s3811_s25, 1 }
 0x5d1   : > { %s1764_s28 = sadd.s32 %s3812_s5, %s2047_s7 }
 0x5d2   : > { %2136 = vmatmul.mubr.msk.bf16.vlgmr.msra.gmra.mrb[8].mxu1 %vm943_vm6, %v1121_v18  ;;  %2142 = vmatmul.mubr.msk.bf16.vlgmr.msra.gmra.mrb[12].mxu0 %vm943_vm6, %v1243_v19  ;;  %s2048_s20 = sshll.u32 %s1764_s28, 7 }
 0x5d3   : > { %2146 = vmatpush3.bf16.msra.mxu1 %v1309_v11  ;;  %2147 = vmatprep.mubr.msk.bf16.mxu1 %vm2802_vm3, %v2801_v26  ;;  %v2045_v11 = vld [vmem:[#allocation15] ss:$0 sm:$0xff]  ;;  %s3625_s4 = scalar_lea.hbm %s3817_s24, %s2048_s20 }
 0x5d4   : > { %2153 = vmatprep.mubr.msk.bf16.mxu0 %vm2802_vm3, %v2801_v26  ;;  %2157 = vmatprep.subr.bf16.mxu1 %v2801_v26 }
 0x5d5   : > { %2152 = vmatpush3.bf16.msra.mxu0 %v1355_v23 }
 0x5d6   : > { %2163 = vmatprep.subr.bf16.mxu0 %v2801_v26 }
 0x63c   : > { %v1476_v58 = vpop.permute.xlu0 %1475  ;;  %v1649_v3 = vpop.permute.xlu1 %1648 }
 0x6a5   : > { %v1169_v36 = vpop.f32.mrb[8].mxu1  ;;  %v1296_v37 = vpop.f32.mrb[12].mxu0 }
 0x6a6   : > { %v1170_v38 = vadd.f32 %v1169_v36, %v1130_v33  ;;  %v1297_v39 = vadd.f32 %v1296_v37, %v1257_v34  ;;  %v2137_v40 = vpop.f32.mrb[9].mxu1  ;;  %v2143_v41 = vpop.f32.mrb[13].mxu0 }
 0x6a7   : > { %v1172_v42 = vpop.f32.mrb[10].mxu1  ;;  %v1299_v43 = vpop.f32.mrb[14].mxu0 }
 0x6a8   : > { %v1175_v44 = vpack.c.bf16 %v1170_v38, %v1170_v38  ;;  %v1302_v45 = vpack.c.bf16 %v1297_v39, %v1297_v39  ;;  %v2138_v46 = vpop.f32.mrb[11].mxu1  ;;  %v2144_v47 = vpop.f32.mrb[15].mxu0 }
 0x6aa   : > { %2148 = vmatmul.mubr.msk.bf16.vlgmr.msra.gmra.mrb[12].mxu1 %vm724_vm4, %v1302_v45  ;;  %2154 = vmatmul.mubr.msk.bf16.vlgmr.msra.gmra.mrb[16].mxu0 %vm724_vm4, %v1175_v44 }
 0x6ab   : > { %2158 = vmatpush3.bf16.msra.mxu1 %v1473_v35  ;;  %2159 = vmatprep.mubr.msk.bf16.mxu1 %vm2802_vm3, %v2801_v26 }
 0x6ac   : > { %2169 = vmatprep.subr.bf16.mxu1 %v2801_v26  ;;  %2165 = vmatprep.mubr.msk.bf16.mxu0 %vm2802_vm3, %v2801_v26 }
 0x6ad   : > { %2164 = vmatpush3.bf16.msra.mxu0 %v1527_v48 }
 0x6ae   : > { %2175 = vmatprep.subr.bf16.mxu0 %v2801_v26 }
 0x6b2   : > { %2160 = vmatmul.mubr.msk.bf16.vlgmr.msra.gmra.mrb[16].mxu1 %vm943_vm6, %v1463_v20 }
 0x6b3   : > { %2170 = vmatpush3.bf16.msra.mxu1 %v1646_v15  ;;  %2171 = vmatprep.mubr.msk.bf16.mxu1 %vm2802_vm3, %v2801_v26 }
 0x6ba   : > { %2172 = vmatmul.mubr.msk.bf16.vlgmr.msra.gmra.mrb[20].mxu1 %vm943_vm6, %v1636_v21 }
 0x77d   : > { %v1345_v49 = vpop.f32.mrb[12].mxu1  ;;  %v1391_v50 = vpop.f32.mrb[16].mxu0 }
 0x77e   : > { %v1392_v51 = vadd.f32 %v1391_v50, %v1345_v49  ;;  %v2149_v52 = vpop.f32.mrb[13].mxu1  ;;  %v2155_v53 = vpop.f32.mrb[17].mxu0 }
 0x77f   : > { %v1348_v54 = vpop.f32.mrb[14].mxu1  ;;  %v1394_v55 = vpop.f32.mrb[18].mxu0 }
 0x780   : > { %v2150_v56 = vpop.f32.mrb[15].mxu1  ;;  %v2156_v57 = vpop.f32.mrb[19].mxu0 }
 0x785   : > { %v1515_v59 = vpop.f32.mrb[16].mxu1 }
 0x786   : > { %v1516_v61 = vadd.f32 %v1515_v59, %v1476_v58  ;;  %v2161_v62 = vpop.f32.mrb[17].mxu1 }
 0x787   : > { %v1518_v63 = vpop.f32.mrb[18].mxu1 }
 0x788   : > { %v1521_v0 = vpack.c.bf16 %v1516_v61, %v1516_v61  ;;  %v2162_v1 = vpop.f32.mrb[19].mxu1 }
 0x78a   : > { %2166 = vmatmul.mubr.msk.bf16.vlgmr.msra.gmra.mrb[20].mxu0 %vm724_vm4, %v1521_v0 }
 0x78b   : > { %2176 = vmatpush3.bf16.msra.mxu0 %v1700_v2  ;;  %2177 = vmatprep.mubr.msk.bf16.mxu0 %vm2802_vm3, %v2801_v26 }
 0x78d   : > { %v1688_v4 = vpop.f32.mrb[20].mxu1 }
 0x78e   : > { %v1689_v5 = vadd.f32 %v1688_v4, %v1649_v3  ;;  %v2173_v6 = vpop.f32.mrb[21].mxu1 }
 0x78f   : > { %v1691_v7 = vpop.f32.mrb[22].mxu1 }
 0x790   : > { %v1694_v8 = vpack.c.bf16 %v1689_v5, %v1689_v5  ;;  %v2174_v9 = vpop.f32.mrb[23].mxu1 }
 0x792   : > { %2178 = vmatmul.mubr.msk.bf16.vlgmr.msra.gmra.mrb[24].mxu0 %vm724_vm4, %v1694_v8 }
 0x85d   : > { %v1563_v10 = vpop.f32.mrb[20].mxu0 }
 0x85e   : > { %v1569_v12 = vadd.f32 %v1563_v10, %v1392_v51  ;;  %v2167_v13 = vpop.f32.mrb[21].mxu0 }
 0x85f   : > { %v1566_v14 = vpop.f32.mrb[22].mxu0 }
 0x860   : > { %v2168_v17 = vpop.f32.mrb[23].mxu0 }
 0x865   : > { %v1736_v26 = vpop.f32.mrb[24].mxu0 }
 0x866   : > { %v1742_v18 = vadd.f32 %v1736_v26, %v1569_v12  ;;  %v2179_v19 = vpop.f32.mrb[25].mxu0 }
 0x867   : > { %v1739_v20 = vpop.f32.mrb[26].mxu0 }
 0x868   : > { %v1750_v21 = vadd.f32 %v2045_v11, %v1742_v18  ;;  %v2180_v22 = vpop.f32.mrb[27].mxu0 }
 0x86a   : > { %1751 = vst.msk [vmem:[%s3818_s16] sm:$0xff] %vm677_vm5, %v1750_v21 }
 0x86b   : > { %2656 = shalt.err (!%p2653_p10)
}
 0x86c   : > { %s2657_s17 = scalar_lea.hbm %s3625_s4, 128  ;;  %s2661_s15 = scalar_lea.hbm %s3817_s24, 512 }
 0x86d   : > { %p2658_p11 = scmp.ne.s32.totalorder %s3625_s4, %s2657_s17  ;;  %p2662_p6 = scmp.lt.u32.totalorder %s3625_s4, %s3817_s24 }
 0x86e   : > { %p2663_p3 = scmp.lt.u32.totalorder %s2661_s15, %s2657_s17  ;;  %p2665_p9 = scmp.lt.u32.totalorder %s2657_s17, %s3625_s4 }
 0x86f   : > { %p2659_p4 = pnand %p2658_p11, %p3820_p12 }
 0x870   : > { %p2664_p5 = por %p2663_p3, %p2662_p6 }
 0x871   : > { %p2660_p13 = pneg %p2659_p4 }
 0x872   : > { %p2666_p7 = por %p2665_p9, %p2664_p5 }
 0x874   : > { %p2667_p1 = pnand %p2666_p7, %p2660_p13 }
 0x876   : > { %2670 = shalt.err (!%p2667_p1)
}
 0x877   : > { %2219 = dma.vmem_to_hbm [thread:$0]  (%p3820_p12), %s3627_s3, 128, %s3625_s4, %s1753_s2  }
 0x878 PF: > { %s3821_s1 = sld [smem:[#allocation39_spill]]  ;;  %s3822_s9 = sld [smem:[#allocation30_spill]] }
 0x879   : > { %s3823_s12 = sld [smem:[#allocation47_spill]] }
 0x87e   : > { %p2276_p2 = scmp.ge.s32.totalorder %s3821_s1, 2  ;;  %s1780_s0 = sand.u32 1, %s3822_s9  }
 0x87f   : > { %p3824_p8 = scmp.ne.s32.totalorder %s3823_s12, 0  ;;  %s1781_s25 = scalar_lea.sflag [#allocation7], %s1780_s0 }
 0x881   : > { %p2254_p0 = pnand %p2276_p2, %p3824_p8 }
 0x883   : > { %2740 = dma.done.wait (!%p2254_p0), %s1781_s25, 128  }
 0x884   : > { %2742 = vsyncadd (!%p2254_p0), %s1781_s25, 4294967168  ;;  %s31_s23 = sadd.s32 1, %s3821_s1   ;;  %s3825_s13 = sld [smem:[#allocation31_spill]] }
 0x885   : > { %p28_p10 = scmp.ge.s32.totalorder %s31_s23, 6   ;;  %s3826_s14 = sld [smem:[#allocation32_spill]] }
 0x886   : > { %s3827_s15 = sld [smem:[#allocation46_spill]]  ;;  %s3828_s16 = sld [smem:[#allocation33_spill]] }
 0x887   : > { %s3829_s17 = sld [smem:[#allocation34_spill]]  ;;  %s3830_s18 = sld [smem:[#allocation45_spill]] }
 0x888   : > { %s3831_s19 = sld [smem:[#allocation37_spill]]  ;;  %s3832_s20 = sld [smem:[#allocation38_spill]] }
 0x889   : > { %s3833_s21 = sld [smem:[#allocation42_spill]]  ;;  %s3834_s22 = sld [smem:[#allocation43_spill]] }
 0x88a   :  { %30 = sbr.rel (!%p28_p10) target bundleno = 26 (0x1a), region = 151 }
 0x891   :  { %1786 = vsyncpa [#allocation6], 1 }
 0x892   :  { %1788 = vsyncpa [#allocation6 + $0x1], 1 }
 0x893   :  { %1789 = vsyncpa [#allocation10], 1 }
 0x894   :  { %1790 = vsyncpa [#allocation13], 1 }
 0x895   :  { %1791 = vsyncpa [#allocation16], 1 }
 0x896   :  { %1792 = vsyncpa [#allocation7], 1 }
 0x897   :  { %1794 = vsyncpa [#allocation7 + $0x1], 1 }
 0x898   :  { %1795 = vsyncpa [#allocation8], 1 }
 0x899   :  { %1797 = vsyncpa [#allocation8 + $0x1], 1 }
 0x89a   :  { %1798 = vsyncpa [#allocation20], 1 }

</bundles_post_ra>
